<compile_context>
chip_gen: v5e
topology: v5e:2x2
jax: 0.10.0
libtpu: 0.0.40
codegen_flags: <defaults>
</compile_context>

<pallas_src>
import numpy as np
import jax
import jax.numpy as jnp
from jax.experimental import pallas as pl
from jax.experimental.pallas import tpu as pltpu

INPUT_SIZE = 20
IN_PAD = 32         # input features zero-padded 20 -> 32 (sublane-aligned K for 1st matmul)
HIDDEN = 128
NUM_BLOCKS = 4
OUT_HIDDEN = 64
OUT_PAD = 128       # output-layer hidden zero-padded 64 -> 128
BN_EPS = 1e-5

TB_MAX = 512        # batch-tile cap; sweep 256/512/1024 per chip (512 is a solid default)


def _round_up(v, m):
    return (v + m - 1) // m * m


def _choose_tb(B):
    """Pick the batch tile size.

    Large tiles amortize the ~0.35us per-grid-step overhead and the serial 10-matmul
    MXU fill/drain chain; but whenever the batch is large enough we keep >= 2 tiles so
    v7x's two TensorCores both get work on the "parallel" grid axis.
    """
    b = _round_up(max(B, 16), 16)                 # bf16 sublane packing granularity
    if b < 2 * 128:
        return b                                  # small batch: a single tile
    tb = (_round_up(b, 128) // 2 // 128) * 128    # largest 128-multiple giving >= 2 tiles
    return max(128, min(TB_MAX, tb))


# --------------------------------- kernel ---------------------------------
def compact_resnet_kernel(
    x_ref,                      # (TB, IN_PAD)               bf16
    w_in_ref, b_in_ref,         # (IN_PAD, HIDDEN) bf16 (BN folded), (1, HIDDEN) f32
    w1s_ref, b1s_ref,           # (NB, HIDDEN, HIDDEN) bf16, (NB, 1, HIDDEN) f32
    w2s_ref, b2s_ref,           # (NB, HIDDEN, HIDDEN) bf16, (NB, 1, HIDDEN) f32
    w_h_ref, b_h_ref,           # (HIDDEN, OUT_PAD) bf16,    (1, OUT_PAD) f32
    w_out_ref,                  # (1, OUT_PAD) f32  (final 64->1 weights as a lane row)
    b_out_ref,                  # (1, 1) f32 scalar, in SMEM
    out_ref,                    # (1, 1, TB) f32  (lane-dense output tile)
):
    # ---- input layer: Linear (BN folded) + ReLU   (Dropout = identity, eval mode) ----
    h = jnp.dot(x_ref[...], w_in_ref[...], preferred_element_type=jnp.float32)
    h = jnp.maximum(h + b_in_ref[...], 0.0)

    # ---- residual blocks (statically unrolled) ----
    for i in range(NUM_BLOCKS):
        residual = h
        t = jnp.dot(h.astype(jnp.bfloat16), w1s_ref[i],
                    preferred_element_type=jnp.float32)
        t = jnp.maximum(t + b1s_ref[i], 0.0)                     # ReLU (Dropout = identity)
        t = jnp.dot(t.astype(jnp.bfloat16), w2s_ref[i],
                    preferred_element_type=jnp.float32)
        t = t + b2s_ref[i]
        h = jnp.maximum(t + residual, 0.0)                       # residual add + ReLU

    # ---- output layer: Linear(128->64, padded to 128, BN folded) + ReLU ----
    o = jnp.dot(h.astype(jnp.bfloat16), w_h_ref[...],
                preferred_element_type=jnp.float32)
    o = jnp.maximum(o + b_h_ref[...], 0.0)

    # ---- final 64(->128 pad)->1 projection: VPU multiply + XLU row-sum (no N=1 matmul);
    #      transpose (TB,1) -> (1,TB) so the store is lane-dense (unmasked vst) ----
    res = jnp.sum(o * w_out_ref[...], axis=-1, keepdims=True)    # (TB, 1) f32
    out_ref[0] = res.T + b_out_ref[0, 0]


# --------------------------------- wrapper ---------------------------------
def compact_resnet_forward(x, params):
    B = x.shape[0]
    TB = _choose_tb(B)
    B_pad = _round_up(B, TB)
    nb = B_pad // TB

    # zero-pad batch -> B_pad rows and features 20 -> 32 lanes, directly in bf16.
    x_p = jnp.zeros((B_pad, IN_PAD), jnp.bfloat16).at[:B, :INPUT_SIZE].set(
        x.astype(jnp.bfloat16))

    (w_in, b_in, w1s, b1s, w2s, b2s, w_h, b_h, w_out_row, b_out) = params
    args = (x_p, w_in, b_in, w1s, b1s, w2s, b2s, w_h, b_h, w_out_row, b_out)

    flops = 2 * B_pad * (IN_PAD * HIDDEN + NUM_BLOCKS * 2 * HIDDEN * HIDDEN
                         + HIDDEN * OUT_PAD + OUT_PAD)
    bytes_accessed = (sum(int(np.prod(a.shape)) * a.dtype.itemsize for a in args)
                      + B_pad * 4)

    const2 = lambda i: (0, 0)
    const3 = lambda i: (0, 0, 0)

    def build_in_specs(single_buffer_weights):
        # Resident weights/biases have constant index_maps; single-buffering them avoids
        # doubling their VMEM footprint (and redundant copies) in the pipeline.
        kw = {"pipeline_mode": pl.Buffered(1)} if single_buffer_weights else {}
        return [
            pl.BlockSpec((TB, IN_PAD), lambda i: (i, 0)),          # x: pipelined per tile
            pl.BlockSpec((IN_PAD, HIDDEN), const2, **kw),
            pl.BlockSpec((1, HIDDEN), const2, **kw),
            pl.BlockSpec((NUM_BLOCKS, HIDDEN, HIDDEN), const3, **kw),
            pl.BlockSpec((NUM_BLOCKS, 1, HIDDEN), const3, **kw),
            pl.BlockSpec((NUM_BLOCKS, HIDDEN, HIDDEN), const3, **kw),
            pl.BlockSpec((NUM_BLOCKS, 1, HIDDEN), const3, **kw),
            pl.BlockSpec((HIDDEN, OUT_PAD), const2, **kw),
            pl.BlockSpec((1, OUT_PAD), const2, **kw),
            pl.BlockSpec((1, OUT_PAD), const2, **kw),
            pl.BlockSpec(memory_space=pltpu.MemorySpace.SMEM),     # b_out scalar in SMEM
        ]

    def run(single_buffer_weights):
        return pl.pallas_call(
            compact_resnet_kernel,
            out_shape=jax.ShapeDtypeStruct((nb, 1, TB), jnp.float32),
            grid=(nb,),
            in_specs=build_in_specs(single_buffer_weights),
            out_specs=pl.BlockSpec((1, 1, TB), lambda i: (i, 0, 0)),
            compiler_params=pltpu.CompilerParams(
                dimension_semantics=("parallel",)),    # v7x: 2 TCs split the batch tiles
            cost_estimate=pl.CostEstimate(
                flops=flops, transcendentals=0, bytes_accessed=bytes_accessed),
        )(*args)

    try:
        out = run(single_buffer_weights=True)
    except Exception:
        # Fallback if this Pallas version rejects pipeline_mode=pl.Buffered(1) on
        # top-level pallas_call BlockSpecs (extra VMEM is harmless for this kernel).
        out = run(single_buffer_weights=False)

    return out.reshape(B_pad)[:B]                      # .squeeze() on (B, 1) -> (B,)


# ----------------------- deterministic parameter construction -----------------------
def _linear_init(key, fan_in, fan_out):
    k1, k2 = jax.random.split(key)
    bound = 1.0 / float(np.sqrt(fan_in))
    w = jax.random.uniform(k1, (fan_in, fan_out), jnp.float32, -bound, bound)
    b = jax.random.uniform(k2, (fan_out,), jnp.float32, -bound, bound)
    return w, b


def _bn_init(key, n):
    k1, k2, k3, k4 = jax.random.split(key, 4)
    gamma = jax.random.uniform(k1, (n,), jnp.float32, 0.5, 1.5)
    beta = jax.random.uniform(k2, (n,), jnp.float32, -0.5, 0.5)
    rm = jax.random.uniform(k3, (n,), jnp.float32, -0.5, 0.5)
    rv = jax.random.uniform(k4, (n,), jnp.float32, 0.5, 1.5)
    return gamma, beta, rm, rv


def _fold_linear_bn(w, b, gamma, beta, rm, rv):
    """Fold eval-mode BatchNorm1d(Linear(x)) into (W * scale, bias)."""
    scale = gamma / jnp.sqrt(rv + BN_EPS)
    w_f = w * scale[None, :]
    b_f = b * scale + beta - rm * scale
    return w_f, b_f.reshape(1, -1)


def make_params(key):
    keys = jax.random.split(key, 32)
    ki = iter(keys)

    # input layer: Linear(20->128) + BN folded; zero-pad K 20 -> 32
    w, b = _linear_init(next(ki), INPUT_SIZE, HIDDEN)
    w_f, b_in = _fold_linear_bn(w, b, *_bn_init(next(ki), HIDDEN))
    w_in = jnp.zeros((IN_PAD, HIDDEN), jnp.float32).at[:INPUT_SIZE].set(w_f)
    w_in = w_in.astype(jnp.bfloat16)

    # residual blocks (stacked along a leading block axis)
    w1s, b1s, w2s, b2s = [], [], [], []
    for _ in range(NUM_BLOCKS):
        w1, bb1 = _linear_init(next(ki), HIDDEN, HIDDEN)
        w1f, b1f = _fold_linear_bn(w1, bb1, *_bn_init(next(ki), HIDDEN))
        w2, bb2 = _linear_init(next(ki), HIDDEN, HIDDEN)
        w2f, b2f = _fold_linear_bn(w2, bb2, *_bn_init(next(ki), HIDDEN))
        w1s.append(w1f.astype(jnp.bfloat16)); b1s.append(b1f)
        w2s.append(w2f.astype(jnp.bfloat16)); b2s.append(b2f)
    w1s = jnp.stack(w1s); b1s = jnp.stack(b1s)
    w2s = jnp.stack(w2s); b2s = jnp.stack(b2s)

    # output layer: Linear(128->64) + BN folded; zero-pad N 64 -> 128; then Linear(64->1)
    wh, bh = _linear_init(next(ki), HIDDEN, OUT_HIDDEN)
    wh_f, bh_f = _fold_linear_bn(wh, bh, *_bn_init(next(ki), OUT_HIDDEN))
    w_h = (jnp.zeros((HIDDEN, OUT_PAD), jnp.float32)
           .at[:, :OUT_HIDDEN].set(wh_f).astype(jnp.bfloat16))
    b_h = jnp.zeros((1, OUT_PAD), jnp.float32).at[:, :OUT_HIDDEN].set(bh_f)

    wo, bo = _linear_init(next(ki), OUT_HIDDEN, 1)
    w_out_row = jnp.zeros((1, OUT_PAD), jnp.float32).at[0, :OUT_HIDDEN].set(wo[:, 0])
    b_out = bo.reshape(1, 1)

    return (w_in, b_in, w1s, b1s, w2s, b2s, w_h, b_h, w_out_row, b_out)


def reference_forward(x, params):
    """Pure-JAX reference using the same folded/padded params and bf16 matmul inputs."""
    (w_in, b_in, w1s, b1s, w2s, b2s, w_h, b_h, w_out_row, b_out) = params
    B = x.shape[0]
    xp = (jnp.zeros((B, IN_PAD), jnp.bfloat16)
          .at[:, :INPUT_SIZE].set(x.astype(jnp.bfloat16)))
    h = jnp.maximum(jnp.dot(xp, w_in, preferred_element_type=jnp.float32) + b_in, 0.0)
    for i in range(NUM_BLOCKS):
        r = h
        t = jnp.maximum(jnp.dot(h.astype(jnp.bfloat16), w1s[i],
                                preferred_element_type=jnp.float32) + b1s[i], 0.0)
        t = jnp.dot(t.astype(jnp.bfloat16), w2s[i],
                    preferred_element_type=jnp.float32) + b2s[i]
        h = jnp.maximum(t + r, 0.0)
    o = jnp.maximum(jnp.dot(h.astype(jnp.bfloat16), w_h,
                            preferred_element_type=jnp.float32) + b_h, 0.0)
    return jnp.sum(o * w_out_row, axis=-1) + b_out[0, 0]


if __name__ == "__main__":
    key = jax.random.PRNGKey(0)
    kx, kp = jax.random.split(key)

    batch = 8
    x = jax.random.normal(kx, (batch, INPUT_SIZE), dtype=jnp.float32)
    params = make_params(kp)

    out = jax.block_until_ready(compact_resnet_forward(x, params))

    ref = reference_forward(x, params)
    assert out.shape == (batch,), out.shape
    np.testing.assert_allclose(np.asarray(out), np.asarray(ref), rtol=1e-3, atol=1e-3)

    print("KERNEL_OK")
</pallas_src>

<mosaic_0001>
module attributes {stable_mosaic.version = 11 : i64} {
  func.func @compact_resnet_kernel(%arg0: i32, %arg1: memref<16x32xbf16, #tpu.memory_space<vmem>>, %arg2: memref<32x128xbf16, #tpu.memory_space<vmem>>, %arg3: memref<1x128xf32, #tpu.memory_space<vmem>>, %arg4: memref<4x128x128xbf16, #tpu.memory_space<vmem>>, %arg5: memref<4x1x128xf32, #tpu.memory_space<vmem>>, %arg6: memref<4x128x128xbf16, #tpu.memory_space<vmem>>, %arg7: memref<4x1x128xf32, #tpu.memory_space<vmem>>, %arg8: memref<128x128xbf16, #tpu.memory_space<vmem>>, %arg9: memref<1x128xf32, #tpu.memory_space<vmem>>, %arg10: memref<1x128xf32, #tpu.memory_space<vmem>>, %arg11: memref<1x1xf32, #tpu.memory_space<smem>>, %arg12: memref<1x1x16xf32, #tpu.memory_space<vmem>>) attributes {dimension_semantics = [#tpu.dimension_semantics<parallel>], iteration_bounds = array<i64: 1>, scalar_prefetch = 0 : i64, scratch_operands = 0 : i64, tpu.core_type = #tpu.core_type<tc>, window_params = [{transform_indices = @transform_0, window_bounds = array<i64: 16, 32>}, {pipeline_mode = #tpu.pipeline_mode<synchronous>, transform_indices = @transform_1, window_bounds = array<i64: 32, 128>}, {pipeline_mode = #tpu.pipeline_mode<synchronous>, transform_indices = @transform_2, window_bounds = array<i64: 1, 128>}, {pipeline_mode = #tpu.pipeline_mode<synchronous>, transform_indices = @transform_3, window_bounds = array<i64: 4, 128, 128>}, {pipeline_mode = #tpu.pipeline_mode<synchronous>, transform_indices = @transform_4, window_bounds = array<i64: 4, 1, 128>}, {pipeline_mode = #tpu.pipeline_mode<synchronous>, transform_indices = @transform_5, window_bounds = array<i64: 4, 128, 128>}, {pipeline_mode = #tpu.pipeline_mode<synchronous>, transform_indices = @transform_6, window_bounds = array<i64: 4, 1, 128>}, {pipeline_mode = #tpu.pipeline_mode<synchronous>, transform_indices = @transform_7, window_bounds = array<i64: 128, 128>}, {pipeline_mode = #tpu.pipeline_mode<synchronous>, transform_indices = @transform_8, window_bounds = array<i64: 1, 128>}, {pipeline_mode = #tpu.pipeline_mode<synchronous>, transform_indices = @transform_9, window_bounds = array<i64: 1, 128>}, {transform_indices = @transform_10, window_bounds = array<i64: 1, 1>}, {transform_indices = @transform_11, window_bounds = array<i64: 1, 1, 16>}]} {
    %c0 = arith.constant 0 : index
    %c0_0 = arith.constant 0 : index
    %0 = vector.load %arg1[%c0, %c0_0] : memref<16x32xbf16, #tpu.memory_space<vmem>>, vector<16x32xbf16>
    %c0_1 = arith.constant 0 : index
    %c0_2 = arith.constant 0 : index
    %1 = vector.load %arg2[%c0_1, %c0_2] : memref<32x128xbf16, #tpu.memory_space<vmem>>, vector<32x128xbf16>
    %cst = arith.constant dense<0.000000e+00> : vector<16x128xf32>
    %2 = tpu.matmul %0, %1, %cst {dimension_numbers = #tpu.dot_dimension_numbers<[1], [0], [0], [1], [0, 0, 1, 1], [], []>} : vector<16x32xbf16>, vector<32x128xbf16>, vector<16x128xf32> -> vector<16x128xf32>
    %c0_3 = arith.constant 0 : index
    %c0_4 = arith.constant 0 : index
    %3 = vector.load %arg3[%c0_3, %c0_4] : memref<1x128xf32, #tpu.memory_space<vmem>>, vector<1x128xf32>
    %4 = vector.broadcast %3 : vector<1x128xf32> to vector<16x128xf32>
    %5 = arith.addf %2, %4 : vector<16x128xf32>
    %cst_5 = arith.constant 0.000000e+00 : f32
    %6 = vector.broadcast %cst_5 : f32 to vector<16x128xf32>
    %7 = arith.maximumf %5, %6 : vector<16x128xf32>
    %8 = arith.truncf %7 : vector<16x128xf32> to vector<16x128xbf16>
    %c0_6 = arith.constant 0 : index
    %c0_7 = arith.constant 0 : index
    %c0_8 = arith.constant 0 : index
    %9 = vector.load %arg4[%c0_6, %c0_7, %c0_8] : memref<4x128x128xbf16, #tpu.memory_space<vmem>>, vector<1x128x128xbf16>
    %10 = vector.shape_cast %9 : vector<1x128x128xbf16> to vector<128x128xbf16>
    %cst_9 = arith.constant dense<0.000000e+00> : vector<16x128xf32>
    %11 = tpu.matmul %8, %10, %cst_9 {dimension_numbers = #tpu.dot_dimension_numbers<[1], [0], [0], [1], [0, 0, 1, 1], [], []>} : vector<16x128xbf16>, vector<128x128xbf16>, vector<16x128xf32> -> vector<16x128xf32>
    %c0_10 = arith.constant 0 : index
    %c0_11 = arith.constant 0 : index
    %c0_12 = arith.constant 0 : index
    %12 = vector.load %arg5[%c0_10, %c0_11, %c0_12] : memref<4x1x128xf32, #tpu.memory_space<vmem>>, vector<1x1x128xf32>
    %13 = vector.shape_cast %12 : vector<1x1x128xf32> to vector<1x128xf32>
    %14 = vector.broadcast %13 : vector<1x128xf32> to vector<16x128xf32>
    %15 = arith.addf %11, %14 : vector<16x128xf32>
    %cst_13 = arith.constant 0.000000e+00 : f32
    %16 = vector.broadcast %cst_13 : f32 to vector<16x128xf32>
    %17 = arith.maximumf %15, %16 : vector<16x128xf32>
    %18 = arith.truncf %17 : vector<16x128xf32> to vector<16x128xbf16>
    %c0_14 = arith.constant 0 : index
    %c0_15 = arith.constant 0 : index
    %c0_16 = arith.constant 0 : index
    %19 = vector.load %arg6[%c0_14, %c0_15, %c0_16] : memref<4x128x128xbf16, #tpu.memory_space<vmem>>, vector<1x128x128xbf16>
    %20 = vector.shape_cast %19 : vector<1x128x128xbf16> to vector<128x128xbf16>
    %cst_17 = arith.constant dense<0.000000e+00> : vector<16x128xf32>
    %21 = tpu.matmul %18, %20, %cst_17 {dimension_numbers = #tpu.dot_dimension_numbers<[1], [0], [0], [1], [0, 0, 1, 1], [], []>} : vector<16x128xbf16>, vector<128x128xbf16>, vector<16x128xf32> -> vector<16x128xf32>
    %c0_18 = arith.constant 0 : index
    %c0_19 = arith.constant 0 : index
    %c0_20 = arith.constant 0 : index
    %22 = vector.load %arg7[%c0_18, %c0_19, %c0_20] : memref<4x1x128xf32, #tpu.memory_space<vmem>>, vector<1x1x128xf32>
    %23 = vector.shape_cast %22 : vector<1x1x128xf32> to vector<1x128xf32>
    %24 = vector.broadcast %23 : vector<1x128xf32> to vector<16x128xf32>
    %25 = arith.addf %21, %24 : vector<16x128xf32>
    %26 = arith.addf %25, %7 : vector<16x128xf32>
    %cst_21 = arith.constant 0.000000e+00 : f32
    %27 = vector.broadcast %cst_21 : f32 to vector<16x128xf32>
    %28 = arith.maximumf %26, %27 : vector<16x128xf32>
    %29 = arith.truncf %28 : vector<16x128xf32> to vector<16x128xbf16>
    %c1 = arith.constant 1 : index
    %c0_22 = arith.constant 0 : index
    %c0_23 = arith.constant 0 : index
    %30 = vector.load %arg4[%c1, %c0_22, %c0_23] : memref<4x128x128xbf16, #tpu.memory_space<vmem>>, vector<1x128x128xbf16>
    %31 = vector.shape_cast %30 : vector<1x128x128xbf16> to vector<128x128xbf16>
    %cst_24 = arith.constant dense<0.000000e+00> : vector<16x128xf32>
    %32 = tpu.matmul %29, %31, %cst_24 {dimension_numbers = #tpu.dot_dimension_numbers<[1], [0], [0], [1], [0, 0, 1, 1], [], []>} : vector<16x128xbf16>, vector<128x128xbf16>, vector<16x128xf32> -> vector<16x128xf32>
    %c1_25 = arith.constant 1 : index
    %c0_26 = arith.constant 0 : index
    %c0_27 = arith.constant 0 : index
    %33 = vector.load %arg5[%c1_25, %c0_26, %c0_27] : memref<4x1x128xf32, #tpu.memory_space<vmem>>, vector<1x1x128xf32>
    %34 = vector.shape_cast %33 : vector<1x1x128xf32> to vector<1x128xf32>
    %35 = vector.broadcast %34 : vector<1x128xf32> to vector<16x128xf32>
    %36 = arith.addf %32, %35 : vector<16x128xf32>
    %cst_28 = arith.constant 0.000000e+00 : f32
    %37 = vector.broadcast %cst_28 : f32 to vector<16x128xf32>
    %38 = arith.maximumf %36, %37 : vector<16x128xf32>
    %39 = arith.truncf %38 : vector<16x128xf32> to vector<16x128xbf16>
    %c1_29 = arith.constant 1 : index
    %c0_30 = arith.constant 0 : index
    %c0_31 = arith.constant 0 : index
    %40 = vector.load %arg6[%c1_29, %c0_30, %c0_31] : memref<4x128x128xbf16, #tpu.memory_space<vmem>>, vector<1x128x128xbf16>
    %41 = vector.shape_cast %40 : vector<1x128x128xbf16> to vector<128x128xbf16>
    %cst_32 = arith.constant dense<0.000000e+00> : vector<16x128xf32>
    %42 = tpu.matmul %39, %41, %cst_32 {dimension_numbers = #tpu.dot_dimension_numbers<[1], [0], [0], [1], [0, 0, 1, 1], [], []>} : vector<16x128xbf16>, vector<128x128xbf16>, vector<16x128xf32> -> vector<16x128xf32>
    %c1_33 = arith.constant 1 : index
    %c0_34 = arith.constant 0 : index
    %c0_35 = arith.constant 0 : index
    %43 = vector.load %arg7[%c1_33, %c0_34, %c0_35] : memref<4x1x128xf32, #tpu.memory_space<vmem>>, vector<1x1x128xf32>
    %44 = vector.shape_cast %43 : vector<1x1x128xf32> to vector<1x128xf32>
    %45 = vector.broadcast %44 : vector<1x128xf32> to vector<16x128xf32>
    %46 = arith.addf %42, %45 : vector<16x128xf32>
    %47 = arith.addf %46, %28 : vector<16x128xf32>
    %cst_36 = arith.constant 0.000000e+00 : f32
    %48 = vector.broadcast %cst_36 : f32 to vector<16x128xf32>
    %49 = arith.maximumf %47, %48 : vector<16x128xf32>
    %50 = arith.truncf %49 : vector<16x128xf32> to vector<16x128xbf16>
    %c2 = arith.constant 2 : index
    %c0_37 = arith.constant 0 : index
    %c0_38 = arith.constant 0 : index
    %51 = vector.load %arg4[%c2, %c0_37, %c0_38] : memref<4x128x128xbf16, #tpu.memory_space<vmem>>, vector<1x128x128xbf16>
    %52 = vector.shape_cast %51 : vector<1x128x128xbf16> to vector<128x128xbf16>
    %cst_39 = arith.constant dense<0.000000e+00> : vector<16x128xf32>
    %53 = tpu.matmul %50, %52, %cst_39 {dimension_numbers = #tpu.dot_dimension_numbers<[1], [0], [0], [1], [0, 0, 1, 1], [], []>} : vector<16x128xbf16>, vector<128x128xbf16>, vector<16x128xf32> -> vector<16x128xf32>
    %c2_40 = arith.constant 2 : index
    %c0_41 = arith.constant 0 : index
    %c0_42 = arith.constant 0 : index
    %54 = vector.load %arg5[%c2_40, %c0_41, %c0_42] : memref<4x1x128xf32, #tpu.memory_space<vmem>>, vector<1x1x128xf32>
    %55 = vector.shape_cast %54 : vector<1x1x128xf32> to vector<1x128xf32>
    %56 = vector.broadcast %55 : vector<1x128xf32> to vector<16x128xf32>
    %57 = arith.addf %53, %56 : vector<16x128xf32>
    %cst_43 = arith.constant 0.000000e+00 : f32
    %58 = vector.broadcast %cst_43 : f32 to vector<16x128xf32>
    %59 = arith.maximumf %57, %58 : vector<16x128xf32>
    %60 = arith.truncf %59 : vector<16x128xf32> to vector<16x128xbf16>
    %c2_44 = arith.constant 2 : index
    %c0_45 = arith.constant 0 : index
    %c0_46 = arith.constant 0 : index
    %61 = vector.load %arg6[%c2_44, %c0_45, %c0_46] : memref<4x128x128xbf16, #tpu.memory_space<vmem>>, vector<1x128x128xbf16>
    %62 = vector.shape_cast %61 : vector<1x128x128xbf16> to vector<128x128xbf16>
    %cst_47 = arith.constant dense<0.000000e+00> : vector<16x128xf32>
    %63 = tpu.matmul %60, %62, %cst_47 {dimension_numbers = #tpu.dot_dimension_numbers<[1], [0], [0], [1], [0, 0, 1, 1], [], []>} : vector<16x128xbf16>, vector<128x128xbf16>, vector<16x128xf32> -> vector<16x128xf32>
    %c2_48 = arith.constant 2 : index
    %c0_49 = arith.constant 0 : index
    %c0_50 = arith.constant 0 : index
    %64 = vector.load %arg7[%c2_48, %c0_49, %c0_50] : memref<4x1x128xf32, #tpu.memory_space<vmem>>, vector<1x1x128xf32>
    %65 = vector.shape_cast %64 : vector<1x1x128xf32> to vector<1x128xf32>
    %66 = vector.broadcast %65 : vector<1x128xf32> to vector<16x128xf32>
    %67 = arith.addf %63, %66 : vector<16x128xf32>
    %68 = arith.addf %67, %49 : vector<16x128xf32>
    %cst_51 = arith.constant 0.000000e+00 : f32
    %69 = vector.broadcast %cst_51 : f32 to vector<16x128xf32>
    %70 = arith.maximumf %68, %69 : vector<16x128xf32>
    %71 = arith.truncf %70 : vector<16x128xf32> to vector<16x128xbf16>
    %c3 = arith.constant 3 : index
    %c0_52 = arith.constant 0 : index
    %c0_53 = arith.constant 0 : index
    %72 = vector.load %arg4[%c3, %c0_52, %c0_53] : memref<4x128x128xbf16, #tpu.memory_space<vmem>>, vector<1x128x128xbf16>
    %73 = vector.shape_cast %72 : vector<1x128x128xbf16> to vector<128x128xbf16>
    %cst_54 = arith.constant dense<0.000000e+00> : vector<16x128xf32>
    %74 = tpu.matmul %71, %73, %cst_54 {dimension_numbers = #tpu.dot_dimension_numbers<[1], [0], [0], [1], [0, 0, 1, 1], [], []>} : vector<16x128xbf16>, vector<128x128xbf16>, vector<16x128xf32> -> vector<16x128xf32>
    %c3_55 = arith.constant 3 : index
    %c0_56 = arith.constant 0 : index
    %c0_57 = arith.constant 0 : index
    %75 = vector.load %arg5[%c3_55, %c0_56, %c0_57] : memref<4x1x128xf32, #tpu.memory_space<vmem>>, vector<1x1x128xf32>
    %76 = vector.shape_cast %75 : vector<1x1x128xf32> to vector<1x128xf32>
    %77 = vector.broadcast %76 : vector<1x128xf32> to vector<16x128xf32>
    %78 = arith.addf %74, %77 : vector<16x128xf32>
    %cst_58 = arith.constant 0.000000e+00 : f32
    %79 = vector.broadcast %cst_58 : f32 to vector<16x128xf32>
    %80 = arith.maximumf %78, %79 : vector<16x128xf32>
    %81 = arith.truncf %80 : vector<16x128xf32> to vector<16x128xbf16>
    %c3_59 = arith.constant 3 : index
    %c0_60 = arith.constant 0 : index
    %c0_61 = arith.constant 0 : index
    %82 = vector.load %arg6[%c3_59, %c0_60, %c0_61] : memref<4x128x128xbf16, #tpu.memory_space<vmem>>, vector<1x128x128xbf16>
    %83 = vector.shape_cast %82 : vector<1x128x128xbf16> to vector<128x128xbf16>
    %cst_62 = arith.constant dense<0.000000e+00> : vector<16x128xf32>
    %84 = tpu.matmul %81, %83, %cst_62 {dimension_numbers = #tpu.dot_dimension_numbers<[1], [0], [0], [1], [0, 0, 1, 1], [], []>} : vector<16x128xbf16>, vector<128x128xbf16>, vector<16x128xf32> -> vector<16x128xf32>
    %c3_63 = arith.constant 3 : index
    %c0_64 = arith.constant 0 : index
    %c0_65 = arith.constant 0 : index
    %85 = vector.load %arg7[%c3_63, %c0_64, %c0_65] : memref<4x1x128xf32, #tpu.memory_space<vmem>>, vector<1x1x128xf32>
    %86 = vector.shape_cast %85 : vector<1x1x128xf32> to vector<1x128xf32>
    %87 = vector.broadcast %86 : vector<1x128xf32> to vector<16x128xf32>
    %88 = arith.addf %84, %87 : vector<16x128xf32>
    %89 = arith.addf %88, %70 : vector<16x128xf32>
    %cst_66 = arith.constant 0.000000e+00 : f32
    %90 = vector.broadcast %cst_66 : f32 to vector<16x128xf32>
    %91 = arith.maximumf %89, %90 : vector<16x128xf32>
    %92 = arith.truncf %91 : vector<16x128xf32> to vector<16x128xbf16>
    %c0_67 = arith.constant 0 : index
    %c0_68 = arith.constant 0 : index
    %93 = vector.load %arg8[%c0_67, %c0_68] : memref<128x128xbf16, #tpu.memory_space<vmem>>, vector<128x128xbf16>
    %cst_69 = arith.constant dense<0.000000e+00> : vector<16x128xf32>
    %94 = tpu.matmul %92, %93, %cst_69 {dimension_numbers = #tpu.dot_dimension_numbers<[1], [0], [0], [1], [0, 0, 1, 1], [], []>} : vector<16x128xbf16>, vector<128x128xbf16>, vector<16x128xf32> -> vector<16x128xf32>
    %c0_70 = arith.constant 0 : index
    %c0_71 = arith.constant 0 : index
    %95 = vector.load %arg9[%c0_70, %c0_71] : memref<1x128xf32, #tpu.memory_space<vmem>>, vector<1x128xf32>
    %96 = vector.broadcast %95 : vector<1x128xf32> to vector<16x128xf32>
    %97 = arith.addf %94, %96 : vector<16x128xf32>
    %cst_72 = arith.constant 0.000000e+00 : f32
    %98 = vector.broadcast %cst_72 : f32 to vector<16x128xf32>
    %99 = arith.maximumf %97, %98 : vector<16x128xf32>
    %c0_73 = arith.constant 0 : index
    %c0_74 = arith.constant 0 : index
    %100 = vector.load %arg10[%c0_73, %c0_74] : memref<1x128xf32, #tpu.memory_space<vmem>>, vector<1x128xf32>
    %101 = vector.broadcast %100 : vector<1x128xf32> to vector<16x128xf32>
    %102 = arith.mulf %99, %101 : vector<16x128xf32>
    %cst_75 = arith.constant dense<0.000000e+00> : vector<16xf32>
    %103 = vector.multi_reduction <add>, %102, %cst_75 [1] : vector<16x128xf32> to vector<16xf32>
    %104 = vector.shape_cast %103 : vector<16xf32> to vector<16x1xf32>
    %105 = tpu.transpose %104, [1, 0] : vector<16x1xf32> -> vector<1x16xf32>
    %c0_76 = arith.constant 0 : index
    %c0_77 = arith.constant 0 : index
    %106 = memref.load %arg11[%c0_76, %c0_77] : memref<1x1xf32, #tpu.memory_space<smem>>
    %107 = vector.broadcast %106 : f32 to vector<1x16xf32>
    %108 = arith.addf %105, %107 : vector<1x16xf32>
    %c0_78 = arith.constant 0 : index
    %c0_79 = arith.constant 0 : index
    %c0_80 = arith.constant 0 : index
    %109 = vector.load %arg12[%c0_78, %c0_79, %c0_80] : memref<1x1x16xf32, #tpu.memory_space<vmem>>, vector<1x1x16xf32>
    %110 = vector.shape_cast %109 : vector<1x1x16xf32> to vector<1x16xf32>
    %111 = vector.shape_cast %108 : vector<1x16xf32> to vector<1x1x16xf32>
    tpu.vector_store %arg12[%c0_78, %c0_79, %c0_80], %111 {strides = array<i32>} : memref<1x1x16xf32, #tpu.memory_space<vmem>>, vector<1x1x16xf32>,
    return
  }
  func.func @transform_0(%arg0: i32) -> (i32, i32) {
    %c0_i32 = arith.constant 0 : i32
    %c0_i32_0 = arith.constant 0 : i32
    return %arg0, %c0_i32 : i32, i32
  }
  func.func @transform_1(%arg0: i32) -> (i32, i32) {
    %c0_i32 = arith.constant 0 : i32
    %c0_i32_0 = arith.constant 0 : i32
    %c0_i32_1 = arith.constant 0 : i32
    return %c0_i32, %c0_i32_0 : i32, i32
  }
  func.func @transform_2(%arg0: i32) -> (i32, i32) {
    %c0_i32 = arith.constant 0 : i32
    %c0_i32_0 = arith.constant 0 : i32
    %c0_i32_1 = arith.constant 0 : i32
    return %c0_i32, %c0_i32_0 : i32, i32
  }
  func.func @transform_3(%arg0: i32) -> (i32, i32, i32) {
    %c0_i32 = arith.constant 0 : i32
    %c0_i32_0 = arith.constant 0 : i32
    %c0_i32_1 = arith.constant 0 : i32
    %c0_i32_2 = arith.constant 0 : i32
    return %c0_i32, %c0_i32_0, %c0_i32_1 : i32, i32, i32
  }
  func.func @transform_4(%arg0: i32) -> (i32, i32, i32) {
    %c0_i32 = arith.constant 0 : i32
    %c0_i32_0 = arith.constant 0 : i32
    %c0_i32_1 = arith.constant 0 : i32
    %c0_i32_2 = arith.constant 0 : i32
    return %c0_i32, %c0_i32_0, %c0_i32_1 : i32, i32, i32
  }
  func.func @transform_5(%arg0: i32) -> (i32, i32, i32) {
    %c0_i32 = arith.constant 0 : i32
    %c0_i32_0 = arith.constant 0 : i32
    %c0_i32_1 = arith.constant 0 : i32
    %c0_i32_2 = arith.constant 0 : i32
    return %c0_i32, %c0_i32_0, %c0_i32_1 : i32, i32, i32
  }
  func.func @transform_6(%arg0: i32) -> (i32, i32, i32) {
    %c0_i32 = arith.constant 0 : i32
    %c0_i32_0 = arith.constant 0 : i32
    %c0_i32_1 = arith.constant 0 : i32
    %c0_i32_2 = arith.constant 0 : i32
    return %c0_i32, %c0_i32_0, %c0_i32_1 : i32, i32, i32
  }
  func.func @transform_7(%arg0: i32) -> (i32, i32) {
    %c0_i32 = arith.constant 0 : i32
    %c0_i32_0 = arith.constant 0 : i32
    %c0_i32_1 = arith.constant 0 : i32
    return %c0_i32, %c0_i32_0 : i32, i32
  }
  func.func @transform_8(%arg0: i32) -> (i32, i32) {
    %c0_i32 = arith.constant 0 : i32
    %c0_i32_0 = arith.constant 0 : i32
    %c0_i32_1 = arith.constant 0 : i32
    return %c0_i32, %c0_i32_0 : i32, i32
  }
  func.func @transform_9(%arg0: i32) -> (i32, i32) {
    %c0_i32 = arith.constant 0 : i32
    %c0_i32_0 = arith.constant 0 : i32
    %c0_i32_1 = arith.constant 0 : i32
    return %c0_i32, %c0_i32_0 : i32, i32
  }
  func.func @transform_10(%arg0: i32) -> (i32, i32) {
    %c0_i32 = arith.constant 0 : i32
    %c0_i32_0 = arith.constant 0 : i32
    %c0_i32_1 = arith.constant 0 : i32
    return %c0_i32, %c0_i32_0 : i32, i32
  }
  func.func @transform_11(%arg0: i32) -> (i32, i32, i32) {
    %c0_i32 = arith.constant 0 : i32
    %c0_i32_0 = arith.constant 0 : i32
    %c0_i32_1 = arith.constant 0 : i32
    return %arg0, %c0_i32, %c0_i32_0 : i32, i32, i32
  }
}

module attributes {stable_mosaic.version = 11 : i64} {
  func.func @compact_resnet_kernel(%arg0: i32, %arg1: memref<16x32xbf16, #tpu.memory_space<vmem>>, %arg2: memref<32x128xbf16, #tpu.memory_space<vmem>>, %arg3: memref<1x128xf32, #tpu.memory_space<vmem>>, %arg4: memref<4x128x128xbf16, #tpu.memory_space<vmem>>, %arg5: memref<4x1x128xf32, #tpu.memory_space<vmem>>, %arg6: memref<4x128x128xbf16, #tpu.memory_space<vmem>>, %arg7: memref<4x1x128xf32, #tpu.memory_space<vmem>>, %arg8: memref<128x128xbf16, #tpu.memory_space<vmem>>, %arg9: memref<1x128xf32, #tpu.memory_space<vmem>>, %arg10: memref<1x128xf32, #tpu.memory_space<vmem>>, %arg11: memref<1x1xf32, #tpu.memory_space<smem>>, %arg12: memref<1x1x16xf32, #tpu.memory_space<vmem>>) attributes {dimension_semantics = [#tpu.dimension_semantics<parallel>], iteration_bounds = array<i64: 1>, scalar_prefetch = 0 : i64, scratch_operands = 0 : i64, tpu.core_type = #tpu.core_type<tc>, window_params = [{transform_indices = @transform_0, window_bounds = array<i64: 16, 32>}, {pipeline_mode = #tpu.pipeline_mode<synchronous>, transform_indices = @transform_1, window_bounds = array<i64: 32, 128>}, {pipeline_mode = #tpu.pipeline_mode<synchronous>, transform_indices = @transform_2, window_bounds = array<i64: 1, 128>}, {pipeline_mode = #tpu.pipeline_mode<synchronous>, transform_indices = @transform_3, window_bounds = array<i64: 4, 128, 128>}, {pipeline_mode = #tpu.pipeline_mode<synchronous>, transform_indices = @transform_4, window_bounds = array<i64: 4, 1, 128>}, {pipeline_mode = #tpu.pipeline_mode<synchronous>, transform_indices = @transform_5, window_bounds = array<i64: 4, 128, 128>}, {pipeline_mode = #tpu.pipeline_mode<synchronous>, transform_indices = @transform_6, window_bounds = array<i64: 4, 1, 128>}, {pipeline_mode = #tpu.pipeline_mode<synchronous>, transform_indices = @transform_7, window_bounds = array<i64: 128, 128>}, {pipeline_mode = #tpu.pipeline_mode<synchronous>, transform_indices = @transform_8, window_bounds = array<i64: 1, 128>}, {pipeline_mode = #tpu.pipeline_mode<synchronous>, transform_indices = @transform_9, window_bounds = array<i64: 1, 128>}, {transform_indices = @transform_10, window_bounds = array<i64: 1, 1>}, {transform_indices = @transform_11, window_bounds = array<i64: 1, 1, 16>}]} {
    %c0 = arith.constant 0 : index
    %c0_0 = arith.constant 0 : index
    %0 = vector.load %arg1[%c0, %c0_0] : memref<16x32xbf16, #tpu.memory_space<vmem>>, vector<16x32xbf16>
    %c0_1 = arith.constant 0 : index
    %c0_2 = arith.constant 0 : index
    %1 = vector.load %arg2[%c0_1, %c0_2] : memref<32x128xbf16, #tpu.memory_space<vmem>>, vector<32x128xbf16>
    %cst = arith.constant dense<0.000000e+00> : vector<16x128xf32>
    %2 = tpu.matmul %0, %1, %cst {dimension_numbers = #tpu.dot_dimension_numbers<[1], [0], [0], [1], [0, 0, 1, 1], [], []>} : vector<16x32xbf16>, vector<32x128xbf16>, vector<16x128xf32> -> vector<16x128xf32>
    %c0_3 = arith.constant 0 : index
    %c0_4 = arith.constant 0 : index
    %3 = vector.load %arg3[%c0_3, %c0_4] : memref<1x128xf32, #tpu.memory_space<vmem>>, vector<1x128xf32>
    %4 = vector.broadcast %3 : vector<1x128xf32> to vector<16x128xf32>
    %5 = arith.addf %2, %4 : vector<16x128xf32>
    %cst_5 = arith.constant 0.000000e+00 : f32
    %6 = vector.broadcast %cst_5 : f32 to vector<16x128xf32>
    %7 = arith.maximumf %5, %6 : vector<16x128xf32>
    %8 = arith.truncf %7 : vector<16x128xf32> to vector<16x128xbf16>
    %c0_6 = arith.constant 0 : index
    %c0_7 = arith.constant 0 : index
    %c0_8 = arith.constant 0 : index
    %9 = vector.load %arg4[%c0_6, %c0_7, %c0_8] : memref<4x128x128xbf16, #tpu.memory_space<vmem>>, vector<1x128x128xbf16>
    %10 = vector.shape_cast %9 : vector<1x128x128xbf16> to vector<128x128xbf16>
    %cst_9 = arith.constant dense<0.000000e+00> : vector<16x128xf32>
    %11 = tpu.matmul %8, %10, %cst_9 {dimension_numbers = #tpu.dot_dimension_numbers<[1], [0], [0], [1], [0, 0, 1, 1], [], []>} : vector<16x128xbf16>, vector<128x128xbf16>, vector<16x128xf32> -> vector<16x128xf32>
    %c0_10 = arith.constant 0 : index
    %c0_11 = arith.constant 0 : index
    %c0_12 = arith.constant 0 : index
    %12 = vector.load %arg5[%c0_10, %c0_11, %c0_12] : memref<4x1x128xf32, #tpu.memory_space<vmem>>, vector<1x1x128xf32>
    %13 = vector.shape_cast %12 : vector<1x1x128xf32> to vector<1x128xf32>
    %14 = vector.broadcast %13 : vector<1x128xf32> to vector<16x128xf32>
    %15 = arith.addf %11, %14 : vector<16x128xf32>
    %cst_13 = arith.constant 0.000000e+00 : f32
    %16 = vector.broadcast %cst_13 : f32 to vector<16x128xf32>
    %17 = arith.maximumf %15, %16 : vector<16x128xf32>
    %18 = arith.truncf %17 : vector<16x128xf32> to vector<16x128xbf16>
    %c0_14 = arith.constant 0 : index
    %c0_15 = arith.constant 0 : index
    %c0_16 = arith.constant 0 : index
    %19 = vector.load %arg6[%c0_14, %c0_15, %c0_16] : memref<4x128x128xbf16, #tpu.memory_space<vmem>>, vector<1x128x128xbf16>
    %20 = vector.shape_cast %19 : vector<1x128x128xbf16> to vector<128x128xbf16>
    %cst_17 = arith.constant dense<0.000000e+00> : vector<16x128xf32>
    %21 = tpu.matmul %18, %20, %cst_17 {dimension_numbers = #tpu.dot_dimension_numbers<[1], [0], [0], [1], [0, 0, 1, 1], [], []>} : vector<16x128xbf16>, vector<128x128xbf16>, vector<16x128xf32> -> vector<16x128xf32>
    %c0_18 = arith.constant 0 : index
    %c0_19 = arith.constant 0 : index
    %c0_20 = arith.constant 0 : index
    %22 = vector.load %arg7[%c0_18, %c0_19, %c0_20] : memref<4x1x128xf32, #tpu.memory_space<vmem>>, vector<1x1x128xf32>
    %23 = vector.shape_cast %22 : vector<1x1x128xf32> to vector<1x128xf32>
    %24 = vector.broadcast %23 : vector<1x128xf32> to vector<16x128xf32>
    %25 = arith.addf %21, %24 : vector<16x128xf32>
    %26 = arith.addf %25, %7 : vector<16x128xf32>
    %cst_21 = arith.constant 0.000000e+00 : f32
    %27 = vector.broadcast %cst_21 : f32 to vector<16x128xf32>
    %28 = arith.maximumf %26, %27 : vector<16x128xf32>
    %29 = arith.truncf %28 : vector<16x128xf32> to vector<16x128xbf16>
    %c1 = arith.constant 1 : index
    %c0_22 = arith.constant 0 : index
    %c0_23 = arith.constant 0 : index
    %30 = vector.load %arg4[%c1, %c0_22, %c0_23] : memref<4x128x128xbf16, #tpu.memory_space<vmem>>, vector<1x128x128xbf16>
    %31 = vector.shape_cast %30 : vector<1x128x128xbf16> to vector<128x128xbf16>
    %cst_24 = arith.constant dense<0.000000e+00> : vector<16x128xf32>
    %32 = tpu.matmul %29, %31, %cst_24 {dimension_numbers = #tpu.dot_dimension_numbers<[1], [0], [0], [1], [0, 0, 1, 1], [], []>} : vector<16x128xbf16>, vector<128x128xbf16>, vector<16x128xf32> -> vector<16x128xf32>
    %c1_25 = arith.constant 1 : index
    %c0_26 = arith.constant 0 : index
    %c0_27 = arith.constant 0 : index
    %33 = vector.load %arg5[%c1_25, %c0_26, %c0_27] : memref<4x1x128xf32, #tpu.memory_space<vmem>>, vector<1x1x128xf32>
    %34 = vector.shape_cast %33 : vector<1x1x128xf32> to vector<1x128xf32>
    %35 = vector.broadcast %34 : vector<1x128xf32> to vector<16x128xf32>
    %36 = arith.addf %32, %35 : vector<16x128xf32>
    %cst_28 = arith.constant 0.000000e+00 : f32
    %37 = vector.broadcast %cst_28 : f32 to vector<16x128xf32>
    %38 = arith.maximumf %36, %37 : vector<16x128xf32>
    %39 = arith.truncf %38 : vector<16x128xf32> to vector<16x128xbf16>
    %c1_29 = arith.constant 1 : index
    %c0_30 = arith.constant 0 : index
    %c0_31 = arith.constant 0 : index
    %40 = vector.load %arg6[%c1_29, %c0_30, %c0_31] : memref<4x128x128xbf16, #tpu.memory_space<vmem>>, vector<1x128x128xbf16>
    %41 = vector.shape_cast %40 : vector<1x128x128xbf16> to vector<128x128xbf16>
    %cst_32 = arith.constant dense<0.000000e+00> : vector<16x128xf32>
    %42 = tpu.matmul %39, %41, %cst_32 {dimension_numbers = #tpu.dot_dimension_numbers<[1], [0], [0], [1], [0, 0, 1, 1], [], []>} : vector<16x128xbf16>, vector<128x128xbf16>, vector<16x128xf32> -> vector<16x128xf32>
    %c1_33 = arith.constant 1 : index
    %c0_34 = arith.constant 0 : index
    %c0_35 = arith.constant 0 : index
    %43 = vector.load %arg7[%c1_33, %c0_34, %c0_35] : memref<4x1x128xf32, #tpu.memory_space<vmem>>, vector<1x1x128xf32>
    %44 = vector.shape_cast %43 : vector<1x1x128xf32> to vector<1x128xf32>
    %45 = vector.broadcast %44 : vector<1x128xf32> to vector<16x128xf32>
    %46 = arith.addf %42, %45 : vector<16x128xf32>
    %47 = arith.addf %46, %28 : vector<16x128xf32>
    %cst_36 = arith.constant 0.000000e+00 : f32
    %48 = vector.broadcast %cst_36 : f32 to vector<16x128xf32>
    %49 = arith.maximumf %47, %48 : vector<16x128xf32>
    %50 = arith.truncf %49 : vector<16x128xf32> to vector<16x128xbf16>
    %c2 = arith.constant 2 : index
    %c0_37 = arith.constant 0 : index
    %c0_38 = arith.constant 0 : index
    %51 = vector.load %arg4[%c2, %c0_37, %c0_38] : memref<4x128x128xbf16, #tpu.memory_space<vmem>>, vector<1x128x128xbf16>
    %52 = vector.shape_cast %51 : vector<1x128x128xbf16> to vector<128x128xbf16>
    %cst_39 = arith.constant dense<0.000000e+00> : vector<16x128xf32>
    %53 = tpu.matmul %50, %52, %cst_39 {dimension_numbers = #tpu.dot_dimension_numbers<[1], [0], [0], [1], [0, 0, 1, 1], [], []>} : vector<16x128xbf16>, vector<128x128xbf16>, vector<16x128xf32> -> vector<16x128xf32>
    %c2_40 = arith.constant 2 : index
    %c0_41 = arith.constant 0 : index
    %c0_42 = arith.constant 0 : index
    %54 = vector.load %arg5[%c2_40, %c0_41, %c0_42] : memref<4x1x128xf32, #tpu.memory_space<vmem>>, vector<1x1x128xf32>
    %55 = vector.shape_cast %54 : vector<1x1x128xf32> to vector<1x128xf32>
    %56 = vector.broadcast %55 : vector<1x128xf32> to vector<16x128xf32>
    %57 = arith.addf %53, %56 : vector<16x128xf32>
    %cst_43 = arith.constant 0.000000e+00 : f32
    %58 = vector.broadcast %cst_43 : f32 to vector<16x128xf32>
    %59 = arith.maximumf %57, %58 : vector<16x128xf32>
    %60 = arith.truncf %59 : vector<16x128xf32> to vector<16x128xbf16>
    %c2_44 = arith.constant 2 : index
    %c0_45 = arith.constant 0 : index
    %c0_46 = arith.constant 0 : index
    %61 = vector.load %arg6[%c2_44, %c0_45, %c0_46] : memref<4x128x128xbf16, #tpu.memory_space<vmem>>, vector<1x128x128xbf16>
    %62 = vector.shape_cast %61 : vector<1x128x128xbf16> to vector<128x128xbf16>
    %cst_47 = arith.constant dense<0.000000e+00> : vector<16x128xf32>
    %63 = tpu.matmul %60, %62, %cst_47 {dimension_numbers = #tpu.dot_dimension_numbers<[1], [0], [0], [1], [0, 0, 1, 1], [], []>} : vector<16x128xbf16>, vector<128x128xbf16>, vector<16x128xf32> -> vector<16x128xf32>
    %c2_48 = arith.constant 2 : index
    %c0_49 = arith.constant 0 : index
    %c0_50 = arith.constant 0 : index
    %64 = vector.load %arg7[%c2_48, %c0_49, %c0_50] : memref<4x1x128xf32, #tpu.memory_space<vmem>>, vector<1x1x128xf32>
    %65 = vector.shape_cast %64 : vector<1x1x128xf32> to vector<1x128xf32>
    %66 = vector.broadcast %65 : vector<1x128xf32> to vector<16x128xf32>
    %67 = arith.addf %63, %66 : vector<16x128xf32>
    %68 = arith.addf %67, %49 : vector<16x128xf32>
    %cst_51 = arith.constant 0.000000e+00 : f32
    %69 = vector.broadcast %cst_51 : f32 to vector<16x128xf32>
    %70 = arith.maximumf %68, %69 : vector<16x128xf32>
    %71 = arith.truncf %70 : vector<16x128xf32> to vector<16x128xbf16>
    %c3 = arith.constant 3 : index
    %c0_52 = arith.constant 0 : index
    %c0_53 = arith.constant 0 : index
    %72 = vector.load %arg4[%c3, %c0_52, %c0_53] : memref<4x128x128xbf16, #tpu.memory_space<vmem>>, vector<1x128x128xbf16>
    %73 = vector.shape_cast %72 : vector<1x128x128xbf16> to vector<128x128xbf16>
    %cst_54 = arith.constant dense<0.000000e+00> : vector<16x128xf32>
    %74 = tpu.matmul %71, %73, %cst_54 {dimension_numbers = #tpu.dot_dimension_numbers<[1], [0], [0], [1], [0, 0, 1, 1], [], []>} : vector<16x128xbf16>, vector<128x128xbf16>, vector<16x128xf32> -> vector<16x128xf32>
    %c3_55 = arith.constant 3 : index
    %c0_56 = arith.constant 0 : index
    %c0_57 = arith.constant 0 : index
    %75 = vector.load %arg5[%c3_55, %c0_56, %c0_57] : memref<4x1x128xf32, #tpu.memory_space<vmem>>, vector<1x1x128xf32>
    %76 = vector.shape_cast %75 : vector<1x1x128xf32> to vector<1x128xf32>
    %77 = vector.broadcast %76 : vector<1x128xf32> to vector<16x128xf32>
    %78 = arith.addf %74, %77 : vector<16x128xf32>
    %cst_58 = arith.constant 0.000000e+00 : f32
    %79 = vector.broadcast %cst_58 : f32 to vector<16x128xf32>
    %80 = arith.maximumf %78, %79 : vector<16x128xf32>
    %81 = arith.truncf %80 : vector<16x128xf32> to vector<16x128xbf16>
    %c3_59 = arith.constant 3 : index
    %c0_60 = arith.constant 0 : index
    %c0_61 = arith.constant 0 : index
    %82 = vector.load %arg6[%c3_59, %c0_60, %c0_61] : memref<4x128x128xbf16, #tpu.memory_space<vmem>>, vector<1x128x128xbf16>
    %83 = vector.shape_cast %82 : vector<1x128x128xbf16> to vector<128x128xbf16>
    %cst_62 = arith.constant dense<0.000000e+00> : vector<16x128xf32>
    %84 = tpu.matmul %81, %83, %cst_62 {dimension_numbers = #tpu.dot_dimension_numbers<[1], [0], [0], [1], [0, 0, 1, 1], [], []>} : vector<16x128xbf16>, vector<128x128xbf16>, vector<16x128xf32> -> vector<16x128xf32>
    %c3_63 = arith.constant 3 : index
    %c0_64 = arith.constant 0 : index
    %c0_65 = arith.constant 0 : index
    %85 = vector.load %arg7[%c3_63, %c0_64, %c0_65] : memref<4x1x128xf32, #tpu.memory_space<vmem>>, vector<1x1x128xf32>
    %86 = vector.shape_cast %85 : vector<1x1x128xf32> to vector<1x128xf32>
    %87 = vector.broadcast %86 : vector<1x128xf32> to vector<16x128xf32>
    %88 = arith.addf %84, %87 : vector<16x128xf32>
    %89 = arith.addf %88, %70 : vector<16x128xf32>
    %cst_66 = arith.constant 0.000000e+00 : f32
    %90 = vector.broadcast %cst_66 : f32 to vector<16x128xf32>
    %91 = arith.maximumf %89, %90 : vector<16x128xf32>
    %92 = arith.truncf %91 : vector<16x128xf32> to vector<16x128xbf16>
    %c0_67 = arith.constant 0 : index
    %c0_68 = arith.constant 0 : index
    %93 = vector.load %arg8[%c0_67, %c0_68] : memref<128x128xbf16, #tpu.memory_space<vmem>>, vector<128x128xbf16>
    %cst_69 = arith.constant dense<0.000000e+00> : vector<16x128xf32>
    %94 = tpu.matmul %92, %93, %cst_69 {dimension_numbers = #tpu.dot_dimension_numbers<[1], [0], [0], [1], [0, 0, 1, 1], [], []>} : vector<16x128xbf16>, vector<128x128xbf16>, vector<16x128xf32> -> vector<16x128xf32>
    %c0_70 = arith.constant 0 : index
    %c0_71 = arith.constant 0 : index
    %95 = vector.load %arg9[%c0_70, %c0_71] : memref<1x128xf32, #tpu.memory_space<vmem>>, vector<1x128xf32>
    %96 = vector.broadcast %95 : vector<1x128xf32> to vector<16x128xf32>
    %97 = arith.addf %94, %96 : vector<16x128xf32>
    %cst_72 = arith.constant 0.000000e+00 : f32
    %98 = vector.broadcast %cst_72 : f32 to vector<16x128xf32>
    %99 = arith.maximumf %97, %98 : vector<16x128xf32>
    %c0_73 = arith.constant 0 : index
    %c0_74 = arith.constant 0 : index
    %100 = vector.load %arg10[%c0_73, %c0_74] : memref<1x128xf32, #tpu.memory_space<vmem>>, vector<1x128xf32>
    %101 = vector.broadcast %100 : vector<1x128xf32> to vector<16x128xf32>
    %102 = arith.mulf %99, %101 : vector<16x128xf32>
    %cst_75 = arith.constant dense<0.000000e+00> : vector<16xf32>
    %103 = vector.multi_reduction <add>, %102, %cst_75 [1] : vector<16x128xf32> to vector<16xf32>
    %104 = vector.shape_cast %103 : vector<16xf32> to vector<16x1xf32>
    %105 = tpu.transpose %104, [1, 0] : vector<16x1xf32> -> vector<1x16xf32>
    %c0_76 = arith.constant 0 : index
    %c0_77 = arith.constant 0 : index
    %106 = memref.load %arg11[%c0_76, %c0_77] : memref<1x1xf32, #tpu.memory_space<smem>>
    %107 = vector.broadcast %106 : f32 to vector<1x16xf32>
    %108 = arith.addf %105, %107 : vector<1x16xf32>
    %c0_78 = arith.constant 0 : index
    %c0_79 = arith.constant 0 : index
    %c0_80 = arith.constant 0 : index
    %109 = vector.load %arg12[%c0_78, %c0_79, %c0_80] : memref<1x1x16xf32, #tpu.memory_space<vmem>>, vector<1x1x16xf32>
    %110 = vector.shape_cast %109 : vector<1x1x16xf32> to vector<1x16xf32>
    %111 = vector.shape_cast %108 : vector<1x16xf32> to vector<1x1x16xf32>
    tpu.vector_store %arg12[%c0_78, %c0_79, %c0_80], %111 {strides = array<i32>} : memref<1x1x16xf32, #tpu.memory_space<vmem>>, vector<1x1x16xf32>,
    return
  }
  func.func @transform_0(%arg0: i32) -> (i32, i32) {
    %c0_i32 = arith.constant 0 : i32
    %c0_i32_0 = arith.constant 0 : i32
    return %arg0, %c0_i32 : i32, i32
  }
  func.func @transform_1(%arg0: i32) -> (i32, i32) {
    %c0_i32 = arith.constant 0 : i32
    %c0_i32_0 = arith.constant 0 : i32
    %c0_i32_1 = arith.constant 0 : i32
    return %c0_i32, %c0_i32_0 : i32, i32
  }
  func.func @transform_2(%arg0: i32) -> (i32, i32) {
    %c0_i32 = arith.constant 0 : i32
    %c0_i32_0 = arith.constant 0 : i32
    %c0_i32_1 = arith.constant 0 : i32
    return %c0_i32, %c0_i32_0 : i32, i32
  }
  func.func @transform_3(%arg0: i32) -> (i32, i32, i32) {
    %c0_i32 = arith.constant 0 : i32
    %c0_i32_0 = arith.constant 0 : i32
    %c0_i32_1 = arith.constant 0 : i32
    %c0_i32_2 = arith.constant 0 : i32
    return %c0_i32, %c0_i32_0, %c0_i32_1 : i32, i32, i32
  }
  func.func @transform_4(%arg0: i32) -> (i32, i32, i32) {
    %c0_i32 = arith.constant 0 : i32
    %c0_i32_0 = arith.constant 0 : i32
    %c0_i32_1 = arith.constant 0 : i32
    %c0_i32_2 = arith.constant 0 : i32
    return %c0_i32, %c0_i32_0, %c0_i32_1 : i32, i32, i32
  }
  func.func @transform_5(%arg0: i32) -> (i32, i32, i32) {
    %c0_i32 = arith.constant 0 : i32
    %c0_i32_0 = arith.constant 0 : i32
    %c0_i32_1 = arith.constant 0 : i32
    %c0_i32_2 = arith.constant 0 : i32
    return %c0_i32, %c0_i32_0, %c0_i32_1 : i32, i32, i32
  }
  func.func @transform_6(%arg0: i32) -> (i32, i32, i32) {
    %c0_i32 = arith.constant 0 : i32
    %c0_i32_0 = arith.constant 0 : i32
    %c0_i32_1 = arith.constant 0 : i32
    %c0_i32_2 = arith.constant 0 : i32
    return %c0_i32, %c0_i32_0, %c0_i32_1 : i32, i32, i32
  }
  func.func @transform_7(%arg0: i32) -> (i32, i32) {
    %c0_i32 = arith.constant 0 : i32
    %c0_i32_0 = arith.constant 0 : i32
    %c0_i32_1 = arith.constant 0 : i32
    return %c0_i32, %c0_i32_0 : i32, i32
  }
  func.func @transform_8(%arg0: i32) -> (i32, i32) {
    %c0_i32 = arith.constant 0 : i32
    %c0_i32_0 = arith.constant 0 : i32
    %c0_i32_1 = arith.constant 0 : i32
    return %c0_i32, %c0_i32_0 : i32, i32
  }
  func.func @transform_9(%arg0: i32) -> (i32, i32) {
    %c0_i32 = arith.constant 0 : i32
    %c0_i32_0 = arith.constant 0 : i32
    %c0_i32_1 = arith.constant 0 : i32
    return %c0_i32, %c0_i32_0 : i32, i32
  }
  func.func @transform_10(%arg0: i32) -> (i32, i32) {
    %c0_i32 = arith.constant 0 : i32
    %c0_i32_0 = arith.constant 0 : i32
    %c0_i32_1 = arith.constant 0 : i32
    return %c0_i32, %c0_i32_0 : i32, i32
  }
  func.func @transform_11(%arg0: i32) -> (i32, i32, i32) {
    %c0_i32 = arith.constant 0 : i32
    %c0_i32_0 = arith.constant 0 : i32
    %c0_i32_1 = arith.constant 0 : i32
    return %arg0, %c0_i32, %c0_i32_0 : i32, i32, i32
  }
}

</mosaic_0001>

<bundles_post_ra>
// kernel: tpu_custom_call.1
= control target key start
LH: loop header
LB: loop body
LE: loop exit
PB: predicated region body
PF: predicated region fallthrough
CT: control target
= control target key end

     0   :  { %17 = vsyncpa [#allocation4], 0  ;;  %s1745_s0 = inlined_call_operand.hbm [shape: bf16[16,32], index: 0, kind: input, shape index: {}]   ;;  %s1746_s1 = inlined_call_operand.hbm [shape: bf16[32,128], index: 1, kind: input, shape index: {}]   ;;  %s1747_s2 = inlined_call_operand.vmem [shape: f32[1,128], index: 2, kind: input, shape index: {}]   ;;  %s1748_s3 = inlined_call_operand.hbm [shape: bf16[4,128,128], index: 3, kind: input, shape index: {}]   ;;  %s1749_s4 = inlined_call_operand.vmem [shape: f32[4,1,128], index: 4, kind: input, shape index: {}]   ;;  %s1750_s5 = inlined_call_operand.hbm [shape: bf16[4,128,128], index: 5, kind: input, shape index: {}]   ;;  %s1751_s6 = inlined_call_operand.hbm [shape: f32[4,1,128], index: 6, kind: input, shape index: {}]   ;;  %s1752_s7 = inlined_call_operand.hbm [shape: bf16[128,128], index: 7, kind: input, shape index: {}]   ;;  %s1753_s8 = inlined_call_operand.vmem [shape: f32[1,128], index: 8, kind: input, shape index: {}]   ;;  %s1754_s9 = inlined_call_operand.vmem [shape: f32[1,128], index: 9, kind: input, shape index: {}]   ;;  %s1755_s10 = inlined_call_operand.<no memory space> [shape: f32[1,1], index: 10, kind: input, shape index: {}]   ;;  %s1756_s11 = inlined_call_operand.hbm [shape: f32[1,1,16], index: 11, kind: output, shape index: {}]  }
   0x1   :  { %18 = vsyncpa [#allocation7], 0 }
   0x2   :  { %19 = vsyncpa [#allocation10], 0 }
   0x3   :  { %20 = vsyncpa [#allocation13], 0 }
   0x4   :  { %21 = vsyncpa [#allocation5], 0  ;;  %s39_s19 = sshll.u32 %s1746_s1, 4  ;;  %s1614_s20 = smov [#allocation6]   ;;  %s40_s19 = int_to_ptr.hbm [resolvable:$true] %s39_s19 }
   0x5   :  { %s41_s21 = sshll.u32 %s1614_s20, 4  ;;  %s69_s24 = sshll.u32 %s1750_s5, 4  ;;  %s42_s21 = int_to_ptr.vmem [resolvable:$true] %s41_s21  ;;  %s70_s24 = int_to_ptr.hbm [resolvable:$true] %s69_s24 }
   0x6   :  { %s1615_s25 = smov 64   ;;  %s1616_s26 = smov 4  }
   0x7   :  { %47 = dma.hbm_to_vmem [thread:$0]  %s40_s19, 256, %s42_s21, [#allocation7], %s1615_s25, %s1615_s25, %s1616_s26  }
   0x8   :  { %s1617_s27 = smov [#allocation9]   ;;  %s26_s1 = sshll.u32 %s1745_s0, 4  ;;  %s27_s1 = int_to_ptr.hbm [resolvable:$true] %s26_s1 }
   0x9   :  { %s71_s28 = sshll.u32 %s1617_s27, 4  ;;  %s54_s13 = sshll.u32 %s1748_s3, 4  ;;  %s72_s28 = int_to_ptr.vmem [resolvable:$true] %s71_s28  ;;  %s55_s13 = int_to_ptr.hbm [resolvable:$true] %s54_s13 }
   0xa   :  { %77 = dma.hbm_to_vmem [thread:$0]  %s70_s24, 4096, %s72_s28, [#allocation10], %s1615_s25, %s1615_s25, %s1616_s26  }
   0xb   :  { %s1618_s14 = smov [#allocation3]   ;;  %s1619_s16 = smov [#allocation8]  }
   0xc   :  { %s28_s15 = sshll.u32 %s1618_s14, 4  ;;  %s56_s0 = sshll.u32 %s1619_s16, 4  ;;  %s29_s15 = int_to_ptr.vmem [resolvable:$true] %s28_s15  ;;  %s57_s0 = int_to_ptr.vmem [resolvable:$true] %s56_s0 }
   0xd   :  { %34 = dma.hbm_to_vmem [thread:$0]  %s27_s1, 128, %s29_s15, [#allocation4], %s1615_s25, %s1615_s25, %s1616_s26  }
   0xe   :  { %s82_s19 = sshll.u32 %s1751_s6, 4  ;;  %s1620_s3 = smov [#allocation11]   ;;  %s83_s19 = int_to_ptr.hbm [resolvable:$true] %s82_s19 }
   0xf   :  { %62 = dma.hbm_to_vmem [thread:$0]  %s55_s13, 4096, %s57_s0, [#allocation7], %s1615_s25, %s1615_s25, %s1616_s26  }
  0x10   :  { %s84_s20 = sshll.u32 %s1620_s3, 4  ;;  %s95_s23 = sshll.u32 %s1752_s7, 4  ;;  %s85_s20 = int_to_ptr.vmem [resolvable:$true] %s84_s20  ;;  %s96_s23 = int_to_ptr.hbm [resolvable:$true] %s95_s23 }
  0x11   :  { %s1621_s24 = smov 16   ;;  %s1622_s27 = smov 1  }
  0x12   :  { %90 = dma.hbm_to_vmem [thread:$0]  %s83_s19, 64, %s85_s20, [#allocation10], %s1621_s24, %s1621_s24, %s1622_s27  }
  0x13   :  { %s1623_s28 = smov [#allocation12]  }
  0x14   :  { %s97_s29 = sshll.u32 %s1623_s28, 4  ;;  %s98_s29 = int_to_ptr.vmem [resolvable:$true] %s97_s29 }
  0x15   :  { %103 = dma.hbm_to_vmem [thread:$0]  %s96_s23, 1024, %s98_s29, [#allocation13], %s1615_s25, %s1615_s25, %s1616_s26  }
  0x16   :  { %1604 = dma.done.wait [#allocation4], 128  }
  0x17   :  { %1605 = vsyncadd [#allocation4], 4294967168 }
  0x18   :  { %1606 = dma.done.wait [#allocation7], 4352  }
  0x19   :  { %1607 = vsyncadd [#allocation7], 4294962944 }
  0x1a   :  { %1608 = dma.done.wait [#allocation10], 4160  }
  0x1b   :  { %1609 = vsyncadd [#allocation10], 4294963136 }
  0x1c   :  { %1610 = dma.done.wait [#allocation13], 1024  }
  0x1d   :  { %1611 = vsyncadd [#allocation13], 4294966272  ;;  %v1340_v0 = vld [vmem:[#allocation6 + $0x8] sm:$0xff]  ;;  %v1339_v2 = vld [vmem:[#allocation6] sm:$0xff]  ;;  %vm162_vm0 = vcmask 261120   ;;  %s1624_s17 = smov [#allocation14]  }
  0x1e   :  { %v1348_v1 = vld [vmem:[#allocation8 + $0x38] sm:$0xff]  ;;  %172 = vmatpush.bf16.msra.mxu0 %v1340_v0  ;;  %v1347_v3 = vld [vmem:[#allocation8 + $0x30] sm:$0xff]  ;;  %v1338_v4 = vld [vmem:[#allocation3] sm:$0xff]  ;;  %s1019_s18 = sshll.u32 %s1624_s17, 4  ;;  %s1021_s3 = sshll.u32 %s1756_s11, 4  ;;  %vm1012_vm1 = vcmask 122880   ;;  %s1020_s18 = int_to_ptr.vmem [resolvable:$true] %s1019_s18  ;;  %s1022_s3 = int_to_ptr.hbm [resolvable:$true] %s1021_s3 }
  0x1f   :  { %251 = vmatpush.bf16.msra.mxu1 %v1348_v1  ;;  %v1346_v5 = vld [vmem:[#allocation8 + $0x28] sm:$0xff]  ;;  %v1345_v6 = vld [vmem:[#allocation8 + $0x20] sm:$0xff]  ;;  %v1344_v7 = vld [vmem:[#allocation8 + $0x18] sm:$0xff] }
  0x20   :  { %v1343_v8 = vld [vmem:[#allocation8 + $0x10] sm:$0xff]  ;;  %v1342_v9 = vld [vmem:[#allocation8 + $0x8] sm:$0xff]  ;;  %v1341_v10 = vld [vmem:[#allocation8] sm:$0xff] }
  0x21   :  { %v1356_v11 = vld [vmem:[#allocation9 + $0x38] sm:$0xff]  ;;  %v1355_v12 = vld [vmem:[#allocation9 + $0x30] sm:$0xff]  ;;  %v1354_v13 = vld [vmem:[#allocation9 + $0x28] sm:$0xff] }
  0x22   :  { %173 = vmatpush.bf16.msra.mxu0 %v1339_v2  ;;  %336 = vmatpush.bf16.msra.mxu2 %v1356_v11  ;;  %v1353_v14 = vld [vmem:[#allocation9 + $0x20] sm:$0xff]  ;;  %v1425_v16 = vld [vmem:[%s1747_s2] ss:$0 sm:$0xff]  ;;  %v1352_v23 = vld [vmem:[#allocation9 + $0x18] sm:$0xff] }
  0x23   :  { %252 = vmatpush.bf16.msra.mxu1 %v1347_v3  ;;  %v1351_v24 = vld [vmem:[#allocation9 + $0x10] sm:$0xff]  ;;  %v1350_v25 = vld [vmem:[#allocation9 + $0x8] sm:$0xff]  ;;  %v1349_v26 = vld [vmem:[#allocation9] sm:$0xff] }
  0x24   :  { %v1364_v27 = vld [vmem:[#allocation8 + $0x78] sm:$0xff]  ;;  %v1363_v28 = vld [vmem:[#allocation8 + $0x70] sm:$0xff]  ;;  %v1362_v29 = vld [vmem:[#allocation8 + $0x68] sm:$0xff] }
  0x25   :  { %1046 = vmatmul.msk.bf16.vlgmr.msra.gmra.mxu0 %vm162_vm0, %v1338_v4  ;;  %425 = vmatpush.bf16.msra.mxu3 %v1364_v27  ;;  %v1361_v30 = vld [vmem:[#allocation8 + $0x60] sm:$0xff]  ;;  %v1426_v32 = vld [vmem:[%s1749_s4] ss:$0 sm:$0xff]  ;;  %v1360_v39 = vld [vmem:[#allocation8 + $0x58] sm:$0xff] }
  0x26   :  { %337 = vmatpush.bf16.msra.mxu2 %v1355_v12  ;;  %v1359_v40 = vld [vmem:[#allocation8 + $0x50] sm:$0xff]  ;;  %v1358_v41 = vld [vmem:[#allocation8 + $0x48] sm:$0xff]  ;;  %v1357_v42 = vld [vmem:[#allocation8 + $0x40] sm:$0xff] }
  0x27   :  { %253 = vmatpush.bf16.msra.mxu1 %v1346_v5  ;;  %v1372_v43 = vld [vmem:[#allocation9 + $0x78] sm:$0xff]  ;;  %v1371_v44 = vld [vmem:[#allocation9 + $0x70] sm:$0xff]  ;;  %v1370_v45 = vld [vmem:[#allocation9 + $0x68] sm:$0xff] }
  0x28   :  { %512 = vmatpush.bf16.msrb.mxu0 %v1372_v43  ;;  %v1369_v46 = vld [vmem:[#allocation9 + $0x60] sm:$0xff]  ;;  %v1368_v57 = vld [vmem:[#allocation9 + $0x58] sm:$0xff]  ;;  %v1367_v58 = vld [vmem:[#allocation9 + $0x50] sm:$0xff] }
  0x29   :  { %426 = vmatpush.bf16.msra.mxu3 %v1363_v28  ;;  %v1427_v48 = vld [vmem:[#allocation11] ss:$0 sm:$0xff]  ;;  %v1366_v59 = vld [vmem:[#allocation9 + $0x48] sm:$0xff]  ;;  %v1380_v61 = vld [vmem:[#allocation8 + $0xb8] sm:$0xff] }
  0x2a   :  { %338 = vmatpush.bf16.msra.mxu2 %v1354_v13  ;;  %v1365_v60 = vld [vmem:[#allocation9 + $0x40] sm:$0xff]  ;;  %v1379_v62 = vld [vmem:[#allocation8 + $0xb0] sm:$0xff]  ;;  %v1378_v63 = vld [vmem:[#allocation8 + $0xa8] sm:$0xff] }
  0x2b   :  { %254 = vmatpush.bf16.msra.mxu1 %v1345_v6  ;;  %v1377_v0 = vld [vmem:[#allocation8 + $0xa0] sm:$0xff]  ;;  %v1428_v2 = vld [vmem:[%s1749_s4 + $0x1] ss:$0 sm:$0xff]  ;;  %v1388_v13 = vld [vmem:[#allocation9 + $0xb8] sm:$0xff] }
  0x2c   :  { %513 = vmatpush.bf16.msrb.mxu0 %v1371_v44  ;;  %v1374_v11 = vld [vmem:[#allocation8 + $0x88] sm:$0xff]  ;;  %v1373_v12 = vld [vmem:[#allocation8 + $0x80] sm:$0xff]  ;;  %v1384_v27 = vld [vmem:[#allocation9 + $0x98] sm:$0xff] }
  0x2d   :  { %427 = vmatpush.bf16.msra.mxu3 %v1362_v29  ;;  %v1383_v28 = vld [vmem:[#allocation9 + $0x90] sm:$0xff]  ;;  %v1382_v29 = vld [vmem:[#allocation9 + $0x88] sm:$0xff]  ;;  %v1392_v43 = vld [vmem:[#allocation8 + $0xd8] sm:$0xff] }
  0x2e   :  { %339 = vmatpush.bf16.msra.mxu2 %v1353_v14  ;;  %v1387_v14 = vld [vmem:[#allocation9 + $0xb0] sm:$0xff] }
  0x2f   :  { %255 = vmatpush.bf16.msra.mxu1 %v1344_v7  ;;  %v1391_v44 = vld [vmem:[#allocation8 + $0xd0] sm:$0xff] }
  0x30   :  { %514 = vmatpush.bf16.msrb.mxu0 %v1370_v45  ;;  %v1390_v45 = vld [vmem:[#allocation8 + $0xc8] sm:$0xff] }
  0x31   :  { %428 = vmatpush.bf16.msra.mxu3 %v1361_v30  ;;  %v1381_v30 = vld [vmem:[#allocation9 + $0x80] sm:$0xff] }
  0x32   :  { %340 = vmatpush.bf16.msra.mxu2 %v1352_v23 }
  0x33   :  { %256 = vmatpush.bf16.msra.mxu1 %v1343_v8 }
  0x34   :  { %515 = vmatpush.bf16.msrb.mxu0 %v1369_v46  ;;  %v1389_v46 = vld [vmem:[#allocation8 + $0xc0] sm:$0xff] }
  0x35   :  { %429 = vmatpush.bf16.msra.mxu3 %v1360_v39 }
  0x36   :  { %341 = vmatpush.bf16.msra.mxu2 %v1351_v24 }
  0x37   :  { %257 = vmatpush.bf16.msra.mxu1 %v1342_v9  ;;  %v1376_v9 = vld [vmem:[#allocation8 + $0x98] sm:$0xff] }
  0x38   :  { %516 = vmatpush.bf16.msrb.mxu0 %v1368_v57 }
  0x39   :  { %430 = vmatpush.bf16.msra.mxu3 %v1359_v40 }
  0x3a   :  { %342 = vmatpush.bf16.msra.mxu2 %v1350_v25 }
  0x3b   :  { %258 = vmatpush.bf16.msra.mxu1 %v1341_v10  ;;  %v1375_v10 = vld [vmem:[#allocation8 + $0x90] sm:$0xff] }
  0x3c   :  { %517 = vmatpush.bf16.msrb.mxu0 %v1367_v58 }
  0x3d   :  { %431 = vmatpush.bf16.msra.mxu3 %v1358_v41 }
  0x3e   :  { %343 = vmatpush.bf16.msra.mxu2 %v1349_v26 }
  0x3f   :  { %601 = vmatpush.bf16.msrb.mxu1 %v1380_v61  ;;  %v1400_v61 = vld [vmem:[#allocation9 + $0xd8] sm:$0xff] }
  0x40   :  { %518 = vmatpush.bf16.msrb.mxu0 %v1366_v59 }
  0x41   :  { %432 = vmatpush.bf16.msra.mxu3 %v1357_v42 }
  0x42   :  { %688 = vmatpush.bf16.msrb.mxu2 %v1388_v13  ;;  %v1408_v13 = vld [vmem:[#allocation12 + $0x18] sm:$0xff] }
  0x43   :  { %602 = vmatpush.bf16.msrb.mxu1 %v1379_v62  ;;  %v1399_v62 = vld [vmem:[#allocation9 + $0xd0] sm:$0xff] }
  0x44   :  { %519 = vmatpush.bf16.msrb.mxu0 %v1365_v60 }
  0x46   :  { %689 = vmatpush.bf16.msrb.mxu2 %v1387_v14  ;;  %v1407_v14 = vld [vmem:[#allocation12 + $0x10] sm:$0xff] }
  0x47   :  { %603 = vmatpush.bf16.msrb.mxu1 %v1378_v63  ;;  %v1398_v63 = vld [vmem:[#allocation9 + $0xc8] sm:$0xff] }
  0x4b   :  { %604 = vmatpush.bf16.msrb.mxu1 %v1377_v0  ;;  %v1397_v0 = vld [vmem:[#allocation9 + $0xc0] sm:$0xff] }
  0x4f   :  { %605 = vmatpush.bf16.msrb.mxu1 %v1376_v9 }
  0x53   :  { %606 = vmatpush.bf16.msrb.mxu1 %v1375_v10 }
  0x57   :  { %607 = vmatpush.bf16.msrb.mxu1 %v1374_v11 }
  0x5b   :  { %608 = vmatpush.bf16.msrb.mxu1 %v1373_v12 }
  0xa2   :  { %v175_v15 = vpop.f32.mrf.mxu0 }
  0xa3   :  { %v176_v17 = vadd.f32 %v1425_v16, %v175_v15  ;;  %v1386_v15 = vld [vmem:[#allocation9 + $0xa8] sm:$0xff] }
  0xa4   :  { %690 = vmatpush.bf16.msrb.mxu2 %v1386_v15  ;;  %v1406_v15 = vld [vmem:[#allocation12 + $0x8] sm:$0xff] }
  0xa5   :  { %v180_v20 = vmax.f32 %v176_v17, 0.0 }
  0xaa   :  { %v177_v18 = vpop.f32.mrf.mxu0 }
  0xab   :  { %v178_v19 = vadd.f32 %v1425_v16, %v177_v18  ;;  %v1385_v16 = vld [vmem:[#allocation9 + $0xa0] sm:$0xff] }
  0xac   :  { %691 = vmatpush.bf16.msrb.mxu2 %v1385_v16  ;;  %v1429_v18 = vld [vmem:[#allocation11 + $0x1] ss:$0 sm:$0xff]  ;;  %v1405_v16 = vld [vmem:[#allocation12] sm:$0xff] }
  0xad   :  { %v181_v21 = vmax.f32 %v178_v19, 0.0 }
  0xaf   :  { %v182_v22 = vpack.c.bf16 %v181_v21, %v180_v20 }
  0xb0   :  { %692 = vmatpush.bf16.msrb.mxu2 %v1384_v27  ;;  %v1434_v27 = vld [vmem:[%s1753_s8] ss:$0 sm:$0xff] }
  0xb1   :  { %259 = vmatmul.bf16.vlgmr.msra.gmra.mxu1 %v182_v22 }
  0xb4   :  { %693 = vmatpush.bf16.msrb.mxu2 %v1383_v28 }
  0xb8   :  { %694 = vmatpush.bf16.msrb.mxu2 %v1382_v29 }
  0xbc   :  { %695 = vmatpush.bf16.msrb.mxu2 %v1381_v30  ;;  %v1435_v30 = vld [vmem:[%s1754_s9] ss:$0 sm:$0xff] }
 0x12e   :  { %v260_v31 = vpop.f32.mrf.mxu1 }
 0x12f   :  { %v261_v33 = vadd.f32 %v1426_v32, %v260_v31  ;;  %v1396_v31 = vld [vmem:[#allocation8 + $0xf8] sm:$0xff] }
 0x130   :  { %777 = vmatpush.bf16.msrb.mxu3 %v1396_v31 }
 0x131   :  { %v265_v36 = vmax.f32 %v261_v33, 0.0  ;;  %v1394_v33 = vld [vmem:[#allocation8 + $0xe8] sm:$0xff] }
 0x136   :  { %v262_v34 = vpop.f32.mrf.mxu1 }
 0x137   :  { %v263_v35 = vadd.f32 %v1426_v32, %v262_v34  ;;  %v1395_v32 = vld [vmem:[#allocation8 + $0xf0] sm:$0xff]  ;;  %v1393_v34 = vld [vmem:[#allocation8 + $0xe0] sm:$0xff] }
 0x138   :  { %778 = vmatpush.bf16.msrb.mxu3 %v1395_v32 }
 0x139   :  { %v266_v37 = vmax.f32 %v263_v35, 0.0 }
 0x13b   :  { %v267_v38 = vpack.c.bf16 %v266_v37, %v265_v36  ;;  %v1430_v36 = vld [vmem:[%s1749_s4 + $0x2] ss:$0 sm:$0xff] }
 0x13c   :  { %779 = vmatpush.bf16.msrb.mxu3 %v1394_v33 }
 0x13d   :  { %344 = vmatmul.bf16.vlgmr.msra.gmra.mxu2 %v267_v38 }
 0x140   :  { %780 = vmatpush.bf16.msrb.mxu3 %v1393_v34 }
 0x144   :  { %781 = vmatpush.bf16.msrb.mxu3 %v1392_v43 }
 0x148   :  { %782 = vmatpush.bf16.msrb.mxu3 %v1391_v44 }
 0x14c   :  { %783 = vmatpush.bf16.msrb.mxu3 %v1390_v45 }
 0x150   :  { %784 = vmatpush.bf16.msrb.mxu3 %v1389_v46 }
 0x1c0   :  { %v345_v47 = vpop.f32.mrf.mxu2 }
 0x1c1   :  { %v346_v49 = vadd.f32 %v1427_v48, %v345_v47  ;;  %v1404_v47 = vld [vmem:[#allocation9 + $0xf8] sm:$0xff] }
 0x1c2   :  { %864 = vmatpush.bf16.msra.mxu0 %v1404_v47 }
 0x1c3   :  { %v350_v51 = vadd.f32 %v346_v49, %v180_v20  ;;  %v1402_v49 = vld [vmem:[#allocation9 + $0xe8] sm:$0xff] }
 0x1c5   :  { %v352_v54 = vmax.f32 %v350_v51, 0.0 }
 0x1c8   :  { %v347_v50 = vpop.f32.mrf.mxu2 }
 0x1c9   :  { %v348_v52 = vadd.f32 %v1427_v48, %v347_v50  ;;  %v1403_v48 = vld [vmem:[#allocation9 + $0xf0] sm:$0xff]  ;;  %v1401_v50 = vld [vmem:[#allocation9 + $0xe0] sm:$0xff] }
 0x1ca   :  { %865 = vmatpush.bf16.msra.mxu0 %v1403_v48 }
 0x1cb   :  { %v351_v53 = vadd.f32 %v348_v52, %v181_v21  ;;  %v1431_v52 = vld [vmem:[#allocation11 + $0x2] ss:$0 sm:$0xff] }
 0x1cd   :  { %v353_v55 = vmax.f32 %v351_v53, 0.0 }
 0x1ce   :  { %866 = vmatpush.bf16.msra.mxu0 %v1402_v49 }
 0x1cf   :  { %v354_v56 = vpack.c.bf16 %v353_v55, %v352_v54 }
 0x1d1   :  { %433 = vmatmul.bf16.vlgmr.msra.gmra.mxu3 %v354_v56 }
 0x1d2   :  { %867 = vmatpush.bf16.msra.mxu0 %v1401_v50 }
 0x1d6   :  { %868 = vmatpush.bf16.msra.mxu0 %v1400_v61 }
 0x1da   :  { %869 = vmatpush.bf16.msra.mxu0 %v1399_v62 }
 0x1de   :  { %870 = vmatpush.bf16.msra.mxu0 %v1398_v63 }
 0x1e2   :  { %871 = vmatpush.bf16.msra.mxu0 %v1397_v0 }
 0x254   :  { %v434_v1 = vpop.f32.mrf.mxu3 }
 0x255   :  { %v435_v3 = vadd.f32 %v1428_v2, %v434_v1  ;;  %v1412_v1 = vld [vmem:[#allocation12 + $0x38] sm:$0xff] }
 0x256   :  { %951 = vmatpush.bf16.msra.mxu1 %v1412_v1 }
 0x257   :  { %v439_v6 = vmax.f32 %v435_v3, 0.0  ;;  %v1410_v3 = vld [vmem:[#allocation12 + $0x28] sm:$0xff] }
 0x25c   :  { %v436_v4 = vpop.f32.mrf.mxu3 }
 0x25d   :  { %v437_v5 = vadd.f32 %v1428_v2, %v436_v4  ;;  %v1411_v2 = vld [vmem:[#allocation12 + $0x30] sm:$0xff]  ;;  %v1409_v4 = vld [vmem:[#allocation12 + $0x20] sm:$0xff] }
 0x25e   :  { %952 = vmatpush.bf16.msra.mxu1 %v1411_v2 }
 0x25f   :  { %v440_v7 = vmax.f32 %v437_v5, 0.0 }
 0x261   :  { %v441_v8 = vpack.c.bf16 %v440_v7, %v439_v6  ;;  %v1432_v6 = vld [vmem:[%s1749_s4 + $0x3] ss:$0 sm:$0xff] }
 0x262   :  { %953 = vmatpush.bf16.msra.mxu1 %v1410_v3 }
 0x263   :  { %520 = vmatmul.bf16.vlgmr.msrb.gmra.mxu0 %v441_v8 }
 0x266   :  { %954 = vmatpush.bf16.msra.mxu1 %v1409_v4 }
 0x26a   :  { %955 = vmatpush.bf16.msra.mxu1 %v1408_v13 }
 0x26e   :  { %956 = vmatpush.bf16.msra.mxu1 %v1407_v14 }
 0x272   :  { %957 = vmatpush.bf16.msra.mxu1 %v1406_v15 }
 0x276   :  { %958 = vmatpush.bf16.msra.mxu1 %v1405_v16 }
 0x2e0   :  { %v521_v17 = vpop.f32.mrf.mxu0 }
 0x2e1   :  { %v522_v19 = vadd.f32 %v1429_v18, %v521_v17 }
 0x2e3   :  { %v526_v21 = vadd.f32 %v522_v19, %v352_v54 }
 0x2e5   :  { %v528_v24 = vmax.f32 %v526_v21, 0.0 }
 0x2e8   :  { %v523_v20 = vpop.f32.mrf.mxu0 }
 0x2e9   :  { %v524_v22 = vadd.f32 %v1429_v18, %v523_v20  ;;  %v1433_v18 = vld [vmem:[#allocation11 + $0x3] ss:$0 sm:$0xff] }
 0x2eb   :  { %v527_v23 = vadd.f32 %v524_v22, %v353_v55 }
 0x2ed   :  { %v529_v25 = vmax.f32 %v527_v23, 0.0 }
 0x2ef   :  { %v530_v26 = vpack.c.bf16 %v529_v25, %v528_v24 }
 0x2f1   :  { %609 = vmatmul.bf16.vlgmr.msrb.gmra.mxu1 %v530_v26 }
 0x36e   :  { %v610_v35 = vpop.f32.mrf.mxu1 }
 0x36f   :  { %v611_v37 = vadd.f32 %v1430_v36, %v610_v35 }
 0x371   :  { %v615_v40 = vmax.f32 %v611_v37, 0.0 }
 0x376   :  { %v612_v38 = vpop.f32.mrf.mxu1 }
 0x377   :  { %v613_v39 = vadd.f32 %v1430_v36, %v612_v38 }
 0x379   :  { %v616_v41 = vmax.f32 %v613_v39, 0.0  ;;  %v1010_v39 = vstv %s1755_s10 }
 0x37b   :  { %v617_v42 = vpack.c.bf16 %v616_v41, %v615_v40 }
 0x37d   :  { %696 = vmatmul.bf16.vlgmr.msrb.gmra.mxu2 %v617_v42 }
 0x400   :  { %v697_v51 = vpop.f32.mrf.mxu2 }
 0x401   :  { %v698_v53 = vadd.f32 %v1431_v52, %v697_v51 }
 0x403   :  { %v702_v55 = vadd.f32 %v698_v53, %v528_v24 }
 0x405   :  { %v704_v58 = vmax.f32 %v702_v55, 0.0 }
 0x408   :  { %v699_v54 = vpop.f32.mrf.mxu2 }
 0x409   :  { %v700_v56 = vadd.f32 %v1431_v52, %v699_v54 }
 0x40b   :  { %v703_v57 = vadd.f32 %v700_v56, %v529_v25 }
 0x40d   :  { %v705_v59 = vmax.f32 %v703_v57, 0.0 }
 0x40f   :  { %v706_v60 = vpack.c.bf16 %v705_v59, %v704_v58 }
 0x411   :  { %785 = vmatmul.bf16.vlgmr.msrb.gmra.mxu3 %v706_v60 }
 0x494   :  { %v786_v5 = vpop.f32.mrf.mxu3 }
 0x495   :  { %v787_v7 = vadd.f32 %v1432_v6, %v786_v5 }
 0x497   :  { %v791_v10 = vmax.f32 %v787_v7, 0.0 }
 0x49c   :  { %v788_v8 = vpop.f32.mrf.mxu3 }
 0x49d   :  { %v789_v9 = vadd.f32 %v1432_v6, %v788_v8 }
 0x49f   :  { %v792_v11 = vmax.f32 %v789_v9, 0.0 }
 0x4a1   :  { %v793_v12 = vpack.c.bf16 %v792_v11, %v791_v10 }
 0x4a3   :  { %872 = vmatmul.bf16.vlgmr.msra.gmra.mxu0 %v793_v12 }
 0x520   :  { %v873_v17 = vpop.f32.mrf.mxu0 }
 0x521   :  { %v874_v19 = vadd.f32 %v1433_v18, %v873_v17 }
 0x523   :  { %v878_v21 = vadd.f32 %v874_v19, %v704_v58 }
 0x525   :  { %v880_v24 = vmax.f32 %v878_v21, 0.0 }
 0x528   :  { %v875_v20 = vpop.f32.mrf.mxu0 }
 0x529   :  { %v876_v22 = vadd.f32 %v1433_v18, %v875_v20 }
 0x52b   :  { %v879_v23 = vadd.f32 %v876_v22, %v705_v59 }
 0x52d   :  { %v881_v25 = vmax.f32 %v879_v23, 0.0 }
 0x52f   :  { %v882_v26 = vpack.c.bf16 %v881_v25, %v880_v24 }
 0x531   :  { %959 = vmatmul.bf16.vlgmr.msra.gmra.mxu1 %v882_v26 }
 0x5ae   :  { %v960_v28 = vpop.f32.mrf.mxu1 }
 0x5af   :  { %v961_v29 = vadd.f32 %v1434_v27, %v960_v28 }
 0x5b1   :  { %v965_v31 = vmax.f32 %v961_v29, 0.0 }
 0x5b3   :  { %v971_v32 = vmul.f32 %v1435_v30, %v965_v31 }
 0x5b5   :  { %973 = vadd.xlane.f32.xlu0 %v971_v32 }
 0x5b6   :  { %v962_v33 = vpop.f32.mrf.mxu1 }
 0x5b7   :  { %v963_v34 = vadd.f32 %v1434_v27, %v962_v33 }
 0x5b9   :  { %v966_v35 = vmax.f32 %v963_v34, 0.0 }
 0x5bb   :  { %v972_v36 = vmul.f32 %v1435_v30, %v966_v35 }
 0x5bd   :  { %975 = vadd.xlane.f32.xlu0 %v972_v36 }
 0x628   :  { %v974_v37 = vpop.xlane.xlu0 %973 }
 0x629   :  { %977 = vxpose.xlu1.b32.start [1/2] (short) (narrow) %v974_v37, 8 }
 0x630   :  { %v976_v38 = vpop.xlane.xlu0 %975 }
 0x631   :  { %978 = vxpose.xlu1.b32.end [2/2] (short) (narrow) %v976_v38, 8 }
 0x6cd   :  { %v993_v40 = vpop.trf.xlu1 }
 0x6ce   :  { %v1011_v41 = vadd.f32 %v1010_v39, %v993_v40 }
 0x6d0   :  { %1013 = vst.msk [vmem:[#allocation14] sm:$0x1] %vm1012_vm1, %v1011_v41 }
 0x6d1   :  { %1024 = dma.vmem_to_hbm [thread:$0]  %s1020_s18, 16, %s1022_s3, [#allocation5]  }
 0x6d2   :  { %1612 = dma.done.wait [#allocation5], 16  }
 0x6d3   :  { %1613 = vsyncadd [#allocation5], 4294967280 }
 0x6d4   :  { %1029 = vsyncpa [#allocation4], 1 }
 0x6d5   :  { %1030 = vsyncpa [#allocation7], 1 }
 0x6d6   :  { %1031 = vsyncpa [#allocation10], 1 }
 0x6d7   :  { %1032 = vsyncpa [#allocation13], 1 }
 0x6d8   :  { %1033 = vsyncpa [#allocation5], 1 }

// kernel: tpu_custom_call.1
= control target key start
LH: loop header
LB: loop body
LE: loop exit
PB: predicated region body
PF: predicated region fallthrough
CT: control target
= control target key end

     0   :  { %17 = vsyncpa [#allocation4], 0  ;;  %s1745_s0 = inlined_call_operand.hbm [shape: bf16[16,32], index: 0, kind: input, shape index: {}]   ;;  %s1746_s1 = inlined_call_operand.hbm [shape: bf16[32,128], index: 1, kind: input, shape index: {}]   ;;  %s1747_s2 = inlined_call_operand.vmem [shape: f32[1,128], index: 2, kind: input, shape index: {}]   ;;  %s1748_s3 = inlined_call_operand.hbm [shape: bf16[4,128,128], index: 3, kind: input, shape index: {}]   ;;  %s1749_s4 = inlined_call_operand.vmem [shape: f32[4,1,128], index: 4, kind: input, shape index: {}]   ;;  %s1750_s5 = inlined_call_operand.hbm [shape: bf16[4,128,128], index: 5, kind: input, shape index: {}]   ;;  %s1751_s6 = inlined_call_operand.hbm [shape: f32[4,1,128], index: 6, kind: input, shape index: {}]   ;;  %s1752_s7 = inlined_call_operand.hbm [shape: bf16[128,128], index: 7, kind: input, shape index: {}]   ;;  %s1753_s8 = inlined_call_operand.vmem [shape: f32[1,128], index: 8, kind: input, shape index: {}]   ;;  %s1754_s9 = inlined_call_operand.vmem [shape: f32[1,128], index: 9, kind: input, shape index: {}]   ;;  %s1755_s10 = inlined_call_operand.<no memory space> [shape: f32[1,1], index: 10, kind: input, shape index: {}]   ;;  %s1756_s11 = inlined_call_operand.hbm [shape: f32[1,1,16], index: 11, kind: output, shape index: {}]  }
   0x1   :  { %18 = vsyncpa [#allocation7], 0 }
   0x2   :  { %19 = vsyncpa [#allocation10], 0 }
   0x3   :  { %20 = vsyncpa [#allocation13], 0 }
   0x4   :  { %21 = vsyncpa [#allocation5], 0  ;;  %s39_s19 = sshll.u32 %s1746_s1, 4  ;;  %s1614_s20 = smov [#allocation6]   ;;  %s40_s19 = int_to_ptr.hbm [resolvable:$true] %s39_s19 }
   0x5   :  { %s41_s21 = sshll.u32 %s1614_s20, 4  ;;  %s69_s24 = sshll.u32 %s1750_s5, 4  ;;  %s42_s21 = int_to_ptr.vmem [resolvable:$true] %s41_s21  ;;  %s70_s24 = int_to_ptr.hbm [resolvable:$true] %s69_s24 }
   0x6   :  { %s1615_s25 = smov 64   ;;  %s1616_s26 = smov 4  }
   0x7   :  { %47 = dma.hbm_to_vmem [thread:$0]  %s40_s19, 256, %s42_s21, [#allocation7], %s1615_s25, %s1615_s25, %s1616_s26  }
   0x8   :  { %s1617_s27 = smov [#allocation9]   ;;  %s26_s1 = sshll.u32 %s1745_s0, 4  ;;  %s27_s1 = int_to_ptr.hbm [resolvable:$true] %s26_s1 }
   0x9   :  { %s71_s28 = sshll.u32 %s1617_s27, 4  ;;  %s54_s13 = sshll.u32 %s1748_s3, 4  ;;  %s72_s28 = int_to_ptr.vmem [resolvable:$true] %s71_s28  ;;  %s55_s13 = int_to_ptr.hbm [resolvable:$true] %s54_s13 }
   0xa   :  { %77 = dma.hbm_to_vmem [thread:$0]  %s70_s24, 4096, %s72_s28, [#allocation10], %s1615_s25, %s1615_s25, %s1616_s26  }
   0xb   :  { %s1618_s14 = smov [#allocation3]   ;;  %s1619_s16 = smov [#allocation8]  }
   0xc   :  { %s28_s15 = sshll.u32 %s1618_s14, 4  ;;  %s56_s0 = sshll.u32 %s1619_s16, 4  ;;  %s29_s15 = int_to_ptr.vmem [resolvable:$true] %s28_s15  ;;  %s57_s0 = int_to_ptr.vmem [resolvable:$true] %s56_s0 }
   0xd   :  { %34 = dma.hbm_to_vmem [thread:$0]  %s27_s1, 128, %s29_s15, [#allocation4], %s1615_s25, %s1615_s25, %s1616_s26  }
   0xe   :  { %s82_s19 = sshll.u32 %s1751_s6, 4  ;;  %s1620_s3 = smov [#allocation11]   ;;  %s83_s19 = int_to_ptr.hbm [resolvable:$true] %s82_s19 }
   0xf   :  { %62 = dma.hbm_to_vmem [thread:$0]  %s55_s13, 4096, %s57_s0, [#allocation7], %s1615_s25, %s1615_s25, %s1616_s26  }
  0x10   :  { %s84_s20 = sshll.u32 %s1620_s3, 4  ;;  %s95_s23 = sshll.u32 %s1752_s7, 4  ;;  %s85_s20 = int_to_ptr.vmem [resolvable:$true] %s84_s20  ;;  %s96_s23 = int_to_ptr.hbm [resolvable:$true] %s95_s23 }
  0x11   :  { %s1621_s24 = smov 16   ;;  %s1622_s27 = smov 1  }
  0x12   :  { %90 = dma.hbm_to_vmem [thread:$0]  %s83_s19, 64, %s85_s20, [#allocation10], %s1621_s24, %s1621_s24, %s1622_s27  }
  0x13   :  { %s1623_s28 = smov [#allocation12]  }
  0x14   :  { %s97_s29 = sshll.u32 %s1623_s28, 4  ;;  %s98_s29 = int_to_ptr.vmem [resolvable:$true] %s97_s29 }
  0x15   :  { %103 = dma.hbm_to_vmem [thread:$0]  %s96_s23, 1024, %s98_s29, [#allocation13], %s1615_s25, %s1615_s25, %s1616_s26  }
  0x16   :  { %1604 = dma.done.wait [#allocation4], 128  }
  0x17   :  { %1605 = vsyncadd [#allocation4], 4294967168 }
  0x18   :  { %1606 = dma.done.wait [#allocation7], 4352  }
  0x19   :  { %1607 = vsyncadd [#allocation7], 4294962944 }
  0x1a   :  { %1608 = dma.done.wait [#allocation10], 4160  }
  0x1b   :  { %1609 = vsyncadd [#allocation10], 4294963136 }
  0x1c   :  { %1610 = dma.done.wait [#allocation13], 1024  }
  0x1d   :  { %1611 = vsyncadd [#allocation13], 4294966272  ;;  %v1340_v0 = vld [vmem:[#allocation6 + $0x8] sm:$0xff]  ;;  %v1339_v2 = vld [vmem:[#allocation6] sm:$0xff]  ;;  %vm162_vm0 = vcmask 261120   ;;  %s1624_s17 = smov [#allocation14]  }
  0x1e   :  { %v1348_v1 = vld [vmem:[#allocation8 + $0x38] sm:$0xff]  ;;  %172 = vmatpush.bf16.msra.mxu0 %v1340_v0  ;;  %v1347_v3 = vld [vmem:[#allocation8 + $0x30] sm:$0xff]  ;;  %v1338_v4 = vld [vmem:[#allocation3] sm:$0xff]  ;;  %s1019_s18 = sshll.u32 %s1624_s17, 4  ;;  %s1021_s3 = sshll.u32 %s1756_s11, 4  ;;  %vm1012_vm1 = vcmask 122880   ;;  %s1020_s18 = int_to_ptr.vmem [resolvable:$true] %s1019_s18  ;;  %s1022_s3 = int_to_ptr.hbm [resolvable:$true] %s1021_s3 }
  0x1f   :  { %251 = vmatpush.bf16.msra.mxu1 %v1348_v1  ;;  %v1346_v5 = vld [vmem:[#allocation8 + $0x28] sm:$0xff]  ;;  %v1345_v6 = vld [vmem:[#allocation8 + $0x20] sm:$0xff]  ;;  %v1344_v7 = vld [vmem:[#allocation8 + $0x18] sm:$0xff] }
  0x20   :  { %v1343_v8 = vld [vmem:[#allocation8 + $0x10] sm:$0xff]  ;;  %v1342_v9 = vld [vmem:[#allocation8 + $0x8] sm:$0xff]  ;;  %v1341_v10 = vld [vmem:[#allocation8] sm:$0xff] }
  0x21   :  { %v1356_v11 = vld [vmem:[#allocation9 + $0x38] sm:$0xff]  ;;  %v1355_v12 = vld [vmem:[#allocation9 + $0x30] sm:$0xff]  ;;  %v1354_v13 = vld [vmem:[#allocation9 + $0x28] sm:$0xff] }
  0x22   :  { %173 = vmatpush.bf16.msra.mxu0 %v1339_v2  ;;  %336 = vmatpush.bf16.msra.mxu2 %v1356_v11  ;;  %v1353_v14 = vld [vmem:[#allocation9 + $0x20] sm:$0xff]  ;;  %v1425_v16 = vld [vmem:[%s1747_s2] ss:$0 sm:$0xff]  ;;  %v1352_v23 = vld [vmem:[#allocation9 + $0x18] sm:$0xff] }
  0x23   :  { %252 = vmatpush.bf16.msra.mxu1 %v1347_v3  ;;  %v1351_v24 = vld [vmem:[#allocation9 + $0x10] sm:$0xff]  ;;  %v1350_v25 = vld [vmem:[#allocation9 + $0x8] sm:$0xff]  ;;  %v1349_v26 = vld [vmem:[#allocation9] sm:$0xff] }
  0x24   :  { %v1364_v27 = vld [vmem:[#allocation8 + $0x78] sm:$0xff]  ;;  %v1363_v28 = vld [vmem:[#allocation8 + $0x70] sm:$0xff]  ;;  %v1362_v29 = vld [vmem:[#allocation8 + $0x68] sm:$0xff] }
  0x25   :  { %1046 = vmatmul.msk.bf16.vlgmr.msra.gmra.mxu0 %vm162_vm0, %v1338_v4  ;;  %425 = vmatpush.bf16.msra.mxu3 %v1364_v27  ;;  %v1361_v30 = vld [vmem:[#allocation8 + $0x60] sm:$0xff]  ;;  %v1426_v32 = vld [vmem:[%s1749_s4] ss:$0 sm:$0xff]  ;;  %v1360_v39 = vld [vmem:[#allocation8 + $0x58] sm:$0xff] }
  0x26   :  { %337 = vmatpush.bf16.msra.mxu2 %v1355_v12  ;;  %v1359_v40 = vld [vmem:[#allocation8 + $0x50] sm:$0xff]  ;;  %v1358_v41 = vld [vmem:[#allocation8 + $0x48] sm:$0xff]  ;;  %v1357_v42 = vld [vmem:[#allocation8 + $0x40] sm:$0xff] }
  0x27   :  { %253 = vmatpush.bf16.msra.mxu1 %v1346_v5  ;;  %v1372_v43 = vld [vmem:[#allocation9 + $0x78] sm:$0xff]  ;;  %v1371_v44 = vld [vmem:[#allocation9 + $0x70] sm:$0xff]  ;;  %v1370_v45 = vld [vmem:[#allocation9 + $0x68] sm:$0xff] }
  0x28   :  { %512 = vmatpush.bf16.msrb.mxu0 %v1372_v43  ;;  %v1369_v46 = vld [vmem:[#allocation9 + $0x60] sm:$0xff]  ;;  %v1368_v57 = vld [vmem:[#allocation9 + $0x58] sm:$0xff]  ;;  %v1367_v58 = vld [vmem:[#allocation9 + $0x50] sm:$0xff] }
  0x29   :  { %426 = vmatpush.bf16.msra.mxu3 %v1363_v28  ;;  %v1427_v48 = vld [vmem:[#allocation11] ss:$0 sm:$0xff]  ;;  %v1366_v59 = vld [vmem:[#allocation9 + $0x48] sm:$0xff]  ;;  %v1380_v61 = vld [vmem:[#allocation8 + $0xb8] sm:$0xff] }
  0x2a   :  { %338 = vmatpush.bf16.msra.mxu2 %v1354_v13  ;;  %v1365_v60 = vld [vmem:[#allocation9 + $0x40] sm:$0xff]  ;;  %v1379_v62 = vld [vmem:[#allocation8 + $0xb0] sm:$0xff]  ;;  %v1378_v63 = vld [vmem:[#allocation8 + $0xa8] sm:$0xff] }
  0x2b   :  { %254 = vmatpush.bf16.msra.mxu1 %v1345_v6  ;;  %v1377_v0 = vld [vmem:[#allocation8 + $0xa0] sm:$0xff]  ;;  %v1428_v2 = vld [vmem:[%s1749_s4 + $0x1] ss:$0 sm:$0xff]  ;;  %v1388_v13 = vld [vmem:[#allocation9 + $0xb8] sm:$0xff] }
  0x2c   :  { %513 = vmatpush.bf16.msrb.mxu0 %v1371_v44  ;;  %v1374_v11 = vld [vmem:[#allocation8 + $0x88] sm:$0xff]  ;;  %v1373_v12 = vld [vmem:[#allocation8 + $0x80] sm:$0xff]  ;;  %v1384_v27 = vld [vmem:[#allocation9 + $0x98] sm:$0xff] }
  0x2d   :  { %427 = vmatpush.bf16.msra.mxu3 %v1362_v29  ;;  %v1383_v28 = vld [vmem:[#allocation9 + $0x90] sm:$0xff]  ;;  %v1382_v29 = vld [vmem:[#allocation9 + $0x88] sm:$0xff]  ;;  %v1392_v43 = vld [vmem:[#allocation8 + $0xd8] sm:$0xff] }
  0x2e   :  { %339 = vmatpush.bf16.msra.mxu2 %v1353_v14  ;;  %v1387_v14 = vld [vmem:[#allocation9 + $0xb0] sm:$0xff] }
  0x2f   :  { %255 = vmatpush.bf16.msra.mxu1 %v1344_v7  ;;  %v1391_v44 = vld [vmem:[#allocation8 + $0xd0] sm:$0xff] }
  0x30   :  { %514 = vmatpush.bf16.msrb.mxu0 %v1370_v45  ;;  %v1390_v45 = vld [vmem:[#allocation8 + $0xc8] sm:$0xff] }
  0x31   :  { %428 = vmatpush.bf16.msra.mxu3 %v1361_v30  ;;  %v1381_v30 = vld [vmem:[#allocation9 + $0x80] sm:$0xff] }
  0x32   :  { %340 = vmatpush.bf16.msra.mxu2 %v1352_v23 }
  0x33   :  { %256 = vmatpush.bf16.msra.mxu1 %v1343_v8 }
  0x34   :  { %515 = vmatpush.bf16.msrb.mxu0 %v1369_v46  ;;  %v1389_v46 = vld [vmem:[#allocation8 + $0xc0] sm:$0xff] }
  0x35   :  { %429 = vmatpush.bf16.msra.mxu3 %v1360_v39 }
  0x36   :  { %341 = vmatpush.bf16.msra.mxu2 %v1351_v24 }
  0x37   :  { %257 = vmatpush.bf16.msra.mxu1 %v1342_v9  ;;  %v1376_v9 = vld [vmem:[#allocation8 + $0x98] sm:$0xff] }
  0x38   :  { %516 = vmatpush.bf16.msrb.mxu0 %v1368_v57 }
  0x39   :  { %430 = vmatpush.bf16.msra.mxu3 %v1359_v40 }
  0x3a   :  { %342 = vmatpush.bf16.msra.mxu2 %v1350_v25 }
  0x3b   :  { %258 = vmatpush.bf16.msra.mxu1 %v1341_v10  ;;  %v1375_v10 = vld [vmem:[#allocation8 + $0x90] sm:$0xff] }
  0x3c   :  { %517 = vmatpush.bf16.msrb.mxu0 %v1367_v58 }
  0x3d   :  { %431 = vmatpush.bf16.msra.mxu3 %v1358_v41 }
  0x3e   :  { %343 = vmatpush.bf16.msra.mxu2 %v1349_v26 }
  0x3f   :  { %601 = vmatpush.bf16.msrb.mxu1 %v1380_v61  ;;  %v1400_v61 = vld [vmem:[#allocation9 + $0xd8] sm:$0xff] }
  0x40   :  { %518 = vmatpush.bf16.msrb.mxu0 %v1366_v59 }
  0x41   :  { %432 = vmatpush.bf16.msra.mxu3 %v1357_v42 }
  0x42   :  { %688 = vmatpush.bf16.msrb.mxu2 %v1388_v13  ;;  %v1408_v13 = vld [vmem:[#allocation12 + $0x18] sm:$0xff] }
  0x43   :  { %602 = vmatpush.bf16.msrb.mxu1 %v1379_v62  ;;  %v1399_v62 = vld [vmem:[#allocation9 + $0xd0] sm:$0xff] }
  0x44   :  { %519 = vmatpush.bf16.msrb.mxu0 %v1365_v60 }
  0x46   :  { %689 = vmatpush.bf16.msrb.mxu2 %v1387_v14  ;;  %v1407_v14 = vld [vmem:[#allocation12 + $0x10] sm:$0xff] }
  0x47   :  { %603 = vmatpush.bf16.msrb.mxu1 %v1378_v63  ;;  %v1398_v63 = vld [vmem:[#allocation9 + $0xc8] sm:$0xff] }
  0x4b   :  { %604 = vmatpush.bf16.msrb.mxu1 %v1377_v0  ;;  %v1397_v0 = vld [vmem:[#allocation9 + $0xc0] sm:$0xff] }
  0x4f   :  { %605 = vmatpush.bf16.msrb.mxu1 %v1376_v9 }
  0x53   :  { %606 = vmatpush.bf16.msrb.mxu1 %v1375_v10 }
  0x57   :  { %607 = vmatpush.bf16.msrb.mxu1 %v1374_v11 }
  0x5b   :  { %608 = vmatpush.bf16.msrb.mxu1 %v1373_v12 }
  0xa2   :  { %v175_v15 = vpop.f32.mrf.mxu0 }
  0xa3   :  { %v176_v17 = vadd.f32 %v1425_v16, %v175_v15  ;;  %v1386_v15 = vld [vmem:[#allocation9 + $0xa8] sm:$0xff] }
  0xa4   :  { %690 = vmatpush.bf16.msrb.mxu2 %v1386_v15  ;;  %v1406_v15 = vld [vmem:[#allocation12 + $0x8] sm:$0xff] }
  0xa5   :  { %v180_v20 = vmax.f32 %v176_v17, 0.0 }
  0xaa   :  { %v177_v18 = vpop.f32.mrf.mxu0 }
  0xab   :  { %v178_v19 = vadd.f32 %v1425_v16, %v177_v18  ;;  %v1385_v16 = vld [vmem:[#allocation9 + $0xa0] sm:$0xff] }
  0xac   :  { %691 = vmatpush.bf16.msrb.mxu2 %v1385_v16  ;;  %v1429_v18 = vld [vmem:[#allocation11 + $0x1] ss:$0 sm:$0xff]  ;;  %v1405_v16 = vld [vmem:[#allocation12] sm:$0xff] }
  0xad   :  { %v181_v21 = vmax.f32 %v178_v19, 0.0 }
  0xaf   :  { %v182_v22 = vpack.c.bf16 %v181_v21, %v180_v20 }
  0xb0   :  { %692 = vmatpush.bf16.msrb.mxu2 %v1384_v27  ;;  %v1434_v27 = vld [vmem:[%s1753_s8] ss:$0 sm:$0xff] }
  0xb1   :  { %259 = vmatmul.bf16.vlgmr.msra.gmra.mxu1 %v182_v22 }
  0xb4   :  { %693 = vmatpush.bf16.msrb.mxu2 %v1383_v28 }
  0xb8   :  { %694 = vmatpush.bf16.msrb.mxu2 %v1382_v29 }
  0xbc   :  { %695 = vmatpush.bf16.msrb.mxu2 %v1381_v30  ;;  %v1435_v30 = vld [vmem:[%s1754_s9] ss:$0 sm:$0xff] }
 0x12e   :  { %v260_v31 = vpop.f32.mrf.mxu1 }
 0x12f   :  { %v261_v33 = vadd.f32 %v1426_v32, %v260_v31  ;;  %v1396_v31 = vld [vmem:[#allocation8 + $0xf8] sm:$0xff] }
 0x130   :  { %777 = vmatpush.bf16.msrb.mxu3 %v1396_v31 }
 0x131   :  { %v265_v36 = vmax.f32 %v261_v33, 0.0  ;;  %v1394_v33 = vld [vmem:[#allocation8 + $0xe8] sm:$0xff] }
 0x136   :  { %v262_v34 = vpop.f32.mrf.mxu1 }
 0x137   :  { %v263_v35 = vadd.f32 %v1426_v32, %v262_v34  ;;  %v1395_v32 = vld [vmem:[#allocation8 + $0xf0] sm:$0xff]  ;;  %v1393_v34 = vld [vmem:[#allocation8 + $0xe0] sm:$0xff] }
 0x138   :  { %778 = vmatpush.bf16.msrb.mxu3 %v1395_v32 }
 0x139   :  { %v266_v37 = vmax.f32 %v263_v35, 0.0 }
 0x13b   :  { %v267_v38 = vpack.c.bf16 %v266_v37, %v265_v36  ;;  %v1430_v36 = vld [vmem:[%s1749_s4 + $0x2] ss:$0 sm:$0xff] }
 0x13c   :  { %779 = vmatpush.bf16.msrb.mxu3 %v1394_v33 }
 0x13d   :  { %344 = vmatmul.bf16.vlgmr.msra.gmra.mxu2 %v267_v38 }
 0x140   :  { %780 = vmatpush.bf16.msrb.mxu3 %v1393_v34 }
 0x144   :  { %781 = vmatpush.bf16.msrb.mxu3 %v1392_v43 }
 0x148   :  { %782 = vmatpush.bf16.msrb.mxu3 %v1391_v44 }
 0x14c   :  { %783 = vmatpush.bf16.msrb.mxu3 %v1390_v45 }
 0x150   :  { %784 = vmatpush.bf16.msrb.mxu3 %v1389_v46 }
 0x1c0   :  { %v345_v47 = vpop.f32.mrf.mxu2 }
 0x1c1   :  { %v346_v49 = vadd.f32 %v1427_v48, %v345_v47  ;;  %v1404_v47 = vld [vmem:[#allocation9 + $0xf8] sm:$0xff] }
 0x1c2   :  { %864 = vmatpush.bf16.msra.mxu0 %v1404_v47 }
 0x1c3   :  { %v350_v51 = vadd.f32 %v346_v49, %v180_v20  ;;  %v1402_v49 = vld [vmem:[#allocation9 + $0xe8] sm:$0xff] }
 0x1c5   :  { %v352_v54 = vmax.f32 %v350_v51, 0.0 }
 0x1c8   :  { %v347_v50 = vpop.f32.mrf.mxu2 }
 0x1c9   :  { %v348_v52 = vadd.f32 %v1427_v48, %v347_v50  ;;  %v1403_v48 = vld [vmem:[#allocation9 + $0xf0] sm:$0xff]  ;;  %v1401_v50 = vld [vmem:[#allocation9 + $0xe0] sm:$0xff] }
 0x1ca   :  { %865 = vmatpush.bf16.msra.mxu0 %v1403_v48 }
 0x1cb   :  { %v351_v53 = vadd.f32 %v348_v52, %v181_v21  ;;  %v1431_v52 = vld [vmem:[#allocation11 + $0x2] ss:$0 sm:$0xff] }
 0x1cd   :  { %v353_v55 = vmax.f32 %v351_v53, 0.0 }
 0x1ce   :  { %866 = vmatpush.bf16.msra.mxu0 %v1402_v49 }
 0x1cf   :  { %v354_v56 = vpack.c.bf16 %v353_v55, %v352_v54 }
 0x1d1   :  { %433 = vmatmul.bf16.vlgmr.msra.gmra.mxu3 %v354_v56 }
 0x1d2   :  { %867 = vmatpush.bf16.msra.mxu0 %v1401_v50 }
 0x1d6   :  { %868 = vmatpush.bf16.msra.mxu0 %v1400_v61 }
 0x1da   :  { %869 = vmatpush.bf16.msra.mxu0 %v1399_v62 }
 0x1de   :  { %870 = vmatpush.bf16.msra.mxu0 %v1398_v63 }
 0x1e2   :  { %871 = vmatpush.bf16.msra.mxu0 %v1397_v0 }
 0x254   :  { %v434_v1 = vpop.f32.mrf.mxu3 }
 0x255   :  { %v435_v3 = vadd.f32 %v1428_v2, %v434_v1  ;;  %v1412_v1 = vld [vmem:[#allocation12 + $0x38] sm:$0xff] }
 0x256   :  { %951 = vmatpush.bf16.msra.mxu1 %v1412_v1 }
 0x257   :  { %v439_v6 = vmax.f32 %v435_v3, 0.0  ;;  %v1410_v3 = vld [vmem:[#allocation12 + $0x28] sm:$0xff] }
 0x25c   :  { %v436_v4 = vpop.f32.mrf.mxu3 }
 0x25d   :  { %v437_v5 = vadd.f32 %v1428_v2, %v436_v4  ;;  %v1411_v2 = vld [vmem:[#allocation12 + $0x30] sm:$0xff]  ;;  %v1409_v4 = vld [vmem:[#allocation12 + $0x20] sm:$0xff] }
 0x25e   :  { %952 = vmatpush.bf16.msra.mxu1 %v1411_v2 }
 0x25f   :  { %v440_v7 = vmax.f32 %v437_v5, 0.0 }
 0x261   :  { %v441_v8 = vpack.c.bf16 %v440_v7, %v439_v6  ;;  %v1432_v6 = vld [vmem:[%s1749_s4 + $0x3] ss:$0 sm:$0xff] }
 0x262   :  { %953 = vmatpush.bf16.msra.mxu1 %v1410_v3 }
 0x263   :  { %520 = vmatmul.bf16.vlgmr.msrb.gmra.mxu0 %v441_v8 }
 0x266   :  { %954 = vmatpush.bf16.msra.mxu1 %v1409_v4 }
 0x26a   :  { %955 = vmatpush.bf16.msra.mxu1 %v1408_v13 }
 0x26e   :  { %956 = vmatpush.bf16.msra.mxu1 %v1407_v14 }
 0x272   :  { %957 = vmatpush.bf16.msra.mxu1 %v1406_v15 }
 0x276   :  { %958 = vmatpush.bf16.msra.mxu1 %v1405_v16 }
 0x2e0   :  { %v521_v17 = vpop.f32.mrf.mxu0 }
 0x2e1   :  { %v522_v19 = vadd.f32 %v1429_v18, %v521_v17 }
 0x2e3   :  { %v526_v21 = vadd.f32 %v522_v19, %v352_v54 }
 0x2e5   :  { %v528_v24 = vmax.f32 %v526_v21, 0.0 }
 0x2e8   :  { %v523_v20 = vpop.f32.mrf.mxu0 }
 0x2e9   :  { %v524_v22 = vadd.f32 %v1429_v18, %v523_v20  ;;  %v1433_v18 = vld [vmem:[#allocation11 + $0x3] ss:$0 sm:$0xff] }
 0x2eb   :  { %v527_v23 = vadd.f32 %v524_v22, %v353_v55 }
 0x2ed   :  { %v529_v25 = vmax.f32 %v527_v23, 0.0 }
 0x2ef   :  { %v530_v26 = vpack.c.bf16 %v529_v25, %v528_v24 }
 0x2f1   :  { %609 = vmatmul.bf16.vlgmr.msrb.gmra.mxu1 %v530_v26 }
 0x36e   :  { %v610_v35 = vpop.f32.mrf.mxu1 }
 0x36f   :  { %v611_v37 = vadd.f32 %v1430_v36, %v610_v35 }
 0x371   :  { %v615_v40 = vmax.f32 %v611_v37, 0.0 }
 0x376   :  { %v612_v38 = vpop.f32.mrf.mxu1 }
 0x377   :  { %v613_v39 = vadd.f32 %v1430_v36, %v612_v38 }
 0x379   :  { %v616_v41 = vmax.f32 %v613_v39, 0.0  ;;  %v1010_v39 = vstv %s1755_s10 }
 0x37b   :  { %v617_v42 = vpack.c.bf16 %v616_v41, %v615_v40 }
 0x37d   :  { %696 = vmatmul.bf16.vlgmr.msrb.gmra.mxu2 %v617_v42 }
 0x400   :  { %v697_v51 = vpop.f32.mrf.mxu2 }
 0x401   :  { %v698_v53 = vadd.f32 %v1431_v52, %v697_v51 }
 0x403   :  { %v702_v55 = vadd.f32 %v698_v53, %v528_v24 }
 0x405   :  { %v704_v58 = vmax.f32 %v702_v55, 0.0 }
 0x408   :  { %v699_v54 = vpop.f32.mrf.mxu2 }
 0x409   :  { %v700_v56 = vadd.f32 %v1431_v52, %v699_v54 }
 0x40b   :  { %v703_v57 = vadd.f32 %v700_v56, %v529_v25 }
 0x40d   :  { %v705_v59 = vmax.f32 %v703_v57, 0.0 }
 0x40f   :  { %v706_v60 = vpack.c.bf16 %v705_v59, %v704_v58 }
 0x411   :  { %785 = vmatmul.bf16.vlgmr.msrb.gmra.mxu3 %v706_v60 }
 0x494   :  { %v786_v5 = vpop.f32.mrf.mxu3 }
 0x495   :  { %v787_v7 = vadd.f32 %v1432_v6, %v786_v5 }
 0x497   :  { %v791_v10 = vmax.f32 %v787_v7, 0.0 }
 0x49c   :  { %v788_v8 = vpop.f32.mrf.mxu3 }
 0x49d   :  { %v789_v9 = vadd.f32 %v1432_v6, %v788_v8 }
 0x49f   :  { %v792_v11 = vmax.f32 %v789_v9, 0.0 }
 0x4a1   :  { %v793_v12 = vpack.c.bf16 %v792_v11, %v791_v10 }
 0x4a3   :  { %872 = vmatmul.bf16.vlgmr.msra.gmra.mxu0 %v793_v12 }
 0x520   :  { %v873_v17 = vpop.f32.mrf.mxu0 }
 0x521   :  { %v874_v19 = vadd.f32 %v1433_v18, %v873_v17 }
 0x523   :  { %v878_v21 = vadd.f32 %v874_v19, %v704_v58 }
 0x525   :  { %v880_v24 = vmax.f32 %v878_v21, 0.0 }
 0x528   :  { %v875_v20 = vpop.f32.mrf.mxu0 }
 0x529   :  { %v876_v22 = vadd.f32 %v1433_v18, %v875_v20 }
 0x52b   :  { %v879_v23 = vadd.f32 %v876_v22, %v705_v59 }
 0x52d   :  { %v881_v25 = vmax.f32 %v879_v23, 0.0 }
 0x52f   :  { %v882_v26 = vpack.c.bf16 %v881_v25, %v880_v24 }
 0x531   :  { %959 = vmatmul.bf16.vlgmr.msra.gmra.mxu1 %v882_v26 }
 0x5ae   :  { %v960_v28 = vpop.f32.mrf.mxu1 }
 0x5af   :  { %v961_v29 = vadd.f32 %v1434_v27, %v960_v28 }
 0x5b1   :  { %v965_v31 = vmax.f32 %v961_v29, 0.0 }
 0x5b3   :  { %v971_v32 = vmul.f32 %v1435_v30, %v965_v31 }
 0x5b5   :  { %973 = vadd.xlane.f32.xlu0 %v971_v32 }
 0x5b6   :  { %v962_v33 = vpop.f32.mrf.mxu1 }
 0x5b7   :  { %v963_v34 = vadd.f32 %v1434_v27, %v962_v33 }
 0x5b9   :  { %v966_v35 = vmax.f32 %v963_v34, 0.0 }
 0x5bb   :  { %v972_v36 = vmul.f32 %v1435_v30, %v966_v35 }
 0x5bd   :  { %975 = vadd.xlane.f32.xlu0 %v972_v36 }
 0x628   :  { %v974_v37 = vpop.xlane.xlu0 %973 }
 0x629   :  { %977 = vxpose.xlu1.b32.start [1/2] (short) (narrow) %v974_v37, 8 }
 0x630   :  { %v976_v38 = vpop.xlane.xlu0 %975 }
 0x631   :  { %978 = vxpose.xlu1.b32.end [2/2] (short) (narrow) %v976_v38, 8 }
 0x6cd   :  { %v993_v40 = vpop.trf.xlu1 }
 0x6ce   :  { %v1011_v41 = vadd.f32 %v1010_v39, %v993_v40 }
 0x6d0   :  { %1013 = vst.msk [vmem:[#allocation14] sm:$0x1] %vm1012_vm1, %v1011_v41 }
 0x6d1   :  { %1024 = dma.vmem_to_hbm [thread:$0]  %s1020_s18, 16, %s1022_s3, [#allocation5]  }
 0x6d2   :  { %1612 = dma.done.wait [#allocation5], 16  }
 0x6d3   :  { %1613 = vsyncadd [#allocation5], 4294967280 }
 0x6d4   :  { %1029 = vsyncpa [#allocation4], 1 }
 0x6d5   :  { %1030 = vsyncpa [#allocation7], 1 }
 0x6d6   :  { %1031 = vsyncpa [#allocation10], 1 }
 0x6d7   :  { %1032 = vsyncpa [#allocation13], 1 }
 0x6d8   :  { %1033 = vsyncpa [#allocation5], 1 }

</bundles_post_ra>
